<compile_context>
chip_gen: v6e
topology: v6e:2x2x1
jax: 0.10.0
libtpu: 0.0.40
codegen_flags: <defaults>
</compile_context>

<pallas_src>
import functools

import jax
import jax.numpy as jnp
from jax.experimental import pallas as pl
from jax.experimental.pallas import tpu as pltpu


def _round_up(x, m):
    return ((x + m - 1) // m) * m


# ---------------------------------------------------------------------------
# Fused Pallas kernel: entire MLP over one tile of rows.
# ---------------------------------------------------------------------------
def _pinn_fused_kernel(x_ref, *refs, n_layers):
    """refs = (w1, b1, w2, b2, ..., wn, bn, o_ref)."""
    o_ref = refs[-1]
    wb_refs = refs[:-1]

    h = x_ref[...]                                    # (tm, in_dim), f32
    for i in range(n_layers):
        w = wb_refs[2 * i][...]                       # (in_i, out_i)
        b = wb_refs[2 * i + 1][...]                   # (1, out_i)
        if w.shape[0] <= 4:
            # Tiny contraction (first layer, in_dim = 2): two broadcast FMAs
            # on the VPU instead of an MXU matmul with K = 2.
            y = jnp.broadcast_to(b, (h.shape[0], w.shape[1]))
            for k in range(w.shape[0]):
                y = y + h[:, k:k + 1] * w[k:k + 1, :]
        else:
            y = jnp.dot(h, w, preferred_element_type=jnp.float32) + b
        if i != n_layers - 1:
            y = jnp.tanh(y)                           # EUP
        h = y
    o_ref[...] = h.astype(o_ref.dtype)


# ---------------------------------------------------------------------------
# Wrapper: pad rows / output lanes, build specs, call the fused kernel.
# ---------------------------------------------------------------------------
def pinn_forward(params, x, *, tile_m=256, lane=128):
    n, in_dim = x.shape
    n_layers = len(params)
    out_dim = params[-1][0].shape[1]

    # Row tiling: shrink tile_m for tiny batches, pad batch to a multiple.
    tile_m = min(tile_m, _round_up(n, 8))
    n_pad = _round_up(n, tile_m)
    if n_pad != n:
        x = jnp.pad(x, ((0, n_pad - n), (0, 0)))

    # Lane-dense final store: pad last layer's output width to 128 lanes.
    out_pad = _round_up(out_dim, lane)
    flat_params = []
    for i, (w, b) in enumerate(params):
        if i == n_layers - 1 and out_pad != out_dim:
            w = jnp.pad(w, ((0, 0), (0, out_pad - out_dim)))
            b = jnp.pad(b, ((0, 0), (0, out_pad - out_dim)))
        flat_params += [w, b]

    in_specs = [pl.BlockSpec((tile_m, in_dim), lambda i: (i, 0))]  # x tile
    for p in flat_params:
        # Full-array, constant-index blocks -> DMA'd once, resident in VMEM.
        in_specs.append(pl.BlockSpec(p.shape, lambda i: (0, 0)))

    kernel = functools.partial(_pinn_fused_kernel, n_layers=n_layers)
    out = pl.pallas_call(
        kernel,
        out_shape=jax.ShapeDtypeStruct((n_pad, out_pad), x.dtype),
        grid_spec=pltpu.PrefetchScalarGridSpec(
            num_scalar_prefetch=0,
            grid=(n_pad // tile_m,),
            in_specs=in_specs,
            out_specs=pl.BlockSpec((tile_m, out_pad), lambda i: (i, 0)),
        ),
        compiler_params=pltpu.CompilerParams(
            dimension_semantics=("parallel",),
        ),
    )(x, *flat_params)
    return out[:n, :out_dim]


# ---------------------------------------------------------------------------
# PINN parameters: list of (W, b), tanh between all but the last layer.
# ---------------------------------------------------------------------------
def init_pinn_params(layers, key):
    """Deterministic init mirroring nn.Linear's default U(-1/sqrt(in), 1/sqrt(in))."""
    params = []
    for i in range(len(layers) - 1):
        fan_in, fan_out = layers[i], layers[i + 1]
        key, kw, kb = jax.random.split(key, 3)
        bound = 1.0 / jnp.sqrt(jnp.float32(fan_in))
        # PyTorch stores W as (out, in); keep it transposed as (in, out) here.
        w = jax.random.uniform(kw, (fan_in, fan_out), jnp.float32, -bound, bound)
        b = jax.random.uniform(kb, (1, fan_out), jnp.float32, -bound, bound)
        params.append((w, b))
    return params


def pinn_forward_ref(params, x):
    """Pure-JAX reference (matches the PyTorch forward)."""
    n_layers = len(params)
    for i, (w, b) in enumerate(params):
        x = x @ w + b
        if i != n_layers - 1:
            x = jnp.tanh(x)
    return x


if __name__ == "__main__":
    # Stokes PINN: inputs (x, y) -> outputs (u, v, p); small hidden widths.
    layers = [2, 32, 32, 32, 3]
    batch = 512          # collocation points (2 row tiles -> both v7x TCs busy)
    tile_m = 256         # MXU-aligned row tile

    key = jax.random.PRNGKey(0)
    key, kx = jax.random.split(key)
    x = jax.random.normal(kx, (batch, layers[0]), dtype=jnp.float32)

    params = init_pinn_params(layers, key)

    out = pinn_forward(params, x, tile_m=tile_m)
    out = jax.block_until_ready(out)

    ref = pinn_forward_ref(params, x)
    assert out.shape == (batch, layers[-1])
    assert jnp.allclose(out, ref, atol=1e-5, rtol=1e-5)

    print("KERNEL_OK")
</pallas_src>

<mosaic_0001>
module attributes {stable_mosaic.version = 11 : i64} {
  func.func @_pinn_fused_kernel(%arg0: i32, %arg1: memref<256x2xf32, #tpu.memory_space<vmem>>, %arg2: memref<2x32xf32, #tpu.memory_space<vmem>>, %arg3: memref<1x32xf32, #tpu.memory_space<vmem>>, %arg4: memref<32x32xf32, #tpu.memory_space<vmem>>, %arg5: memref<1x32xf32, #tpu.memory_space<vmem>>, %arg6: memref<32x32xf32, #tpu.memory_space<vmem>>, %arg7: memref<1x32xf32, #tpu.memory_space<vmem>>, %arg8: memref<32x128xf32, #tpu.memory_space<vmem>>, %arg9: memref<1x128xf32, #tpu.memory_space<vmem>>, %arg10: memref<256x128xf32, #tpu.memory_space<vmem>>) attributes {dimension_semantics = [#tpu.dimension_semantics<parallel>], iteration_bounds = array<i64: 2>, scalar_prefetch = 0 : i64, scratch_operands = 0 : i64, tpu.core_type = #tpu.core_type<tc>, window_params = [{transform_indices = @transform_0, window_bounds = array<i64: 256, 2>}, {pipeline_mode = #tpu.pipeline_mode<synchronous>, transform_indices = @transform_1, window_bounds = array<i64: 2, 32>}, {pipeline_mode = #tpu.pipeline_mode<synchronous>, transform_indices = @transform_2, window_bounds = array<i64: 1, 32>}, {pipeline_mode = #tpu.pipeline_mode<synchronous>, transform_indices = @transform_3, window_bounds = array<i64: 32, 32>}, {pipeline_mode = #tpu.pipeline_mode<synchronous>, transform_indices = @transform_4, window_bounds = array<i64: 1, 32>}, {pipeline_mode = #tpu.pipeline_mode<synchronous>, transform_indices = @transform_5, window_bounds = array<i64: 32, 32>}, {pipeline_mode = #tpu.pipeline_mode<synchronous>, transform_indices = @transform_6, window_bounds = array<i64: 1, 32>}, {pipeline_mode = #tpu.pipeline_mode<synchronous>, transform_indices = @transform_7, window_bounds = array<i64: 32, 128>}, {pipeline_mode = #tpu.pipeline_mode<synchronous>, transform_indices = @transform_8, window_bounds = array<i64: 1, 128>}, {transform_indices = @transform_9, window_bounds = array<i64: 256, 128>}]} {
    %c0 = arith.constant 0 : index
    %c0_0 = arith.constant 0 : index
    %0 = vector.load %arg1[%c0, %c0_0] : memref<256x2xf32, #tpu.memory_space<vmem>>, vector<256x2xf32>
    %c0_1 = arith.constant 0 : index
    %c0_2 = arith.constant 0 : index
    %1 = vector.load %arg2[%c0_1, %c0_2] : memref<2x32xf32, #tpu.memory_space<vmem>>, vector<2x32xf32>
    %c0_3 = arith.constant 0 : index
    %c0_4 = arith.constant 0 : index
    %2 = vector.load %arg3[%c0_3, %c0_4] : memref<1x32xf32, #tpu.memory_space<vmem>>, vector<1x32xf32>
    %3 = vector.shape_cast %2 : vector<1x32xf32> to vector<1x32xf32>
    %4 = vector.broadcast %3 : vector<1x32xf32> to vector<256x32xf32>
    %5 = vector.extract_strided_slice %0 {offsets = [0, 0], sizes = [256, 1], strides = [1, 1]} : vector<256x2xf32> to vector<256x1xf32>
    %6 = vector.extract_strided_slice %1 {offsets = [0, 0], sizes = [1, 32], strides = [1, 1]} : vector<2x32xf32> to vector<1x32xf32>
    %7 = vector.broadcast %5 : vector<256x1xf32> to vector<256x32xf32>
    %8 = vector.broadcast %6 : vector<1x32xf32> to vector<256x32xf32>
    %9 = arith.mulf %7, %8 : vector<256x32xf32>
    %10 = arith.addf %4, %9 : vector<256x32xf32>
    %11 = vector.extract_strided_slice %0 {offsets = [0, 1], sizes = [256, 1], strides = [1, 1]} : vector<256x2xf32> to vector<256x1xf32>
    %12 = vector.extract_strided_slice %1 {offsets = [1, 0], sizes = [1, 32], strides = [1, 1]} : vector<2x32xf32> to vector<1x32xf32>
    %13 = vector.broadcast %11 : vector<256x1xf32> to vector<256x32xf32>
    %14 = vector.broadcast %12 : vector<1x32xf32> to vector<256x32xf32>
    %15 = arith.mulf %13, %14 : vector<256x32xf32>
    %16 = arith.addf %10, %15 : vector<256x32xf32>
    %17 = math.tanh %16 : vector<256x32xf32>
    %c0_5 = arith.constant 0 : index
    %c0_6 = arith.constant 0 : index
    %18 = vector.load %arg4[%c0_5, %c0_6] : memref<32x32xf32, #tpu.memory_space<vmem>>, vector<32x32xf32>
    %c0_7 = arith.constant 0 : index
    %c0_8 = arith.constant 0 : index
    %19 = vector.load %arg5[%c0_7, %c0_8] : memref<1x32xf32, #tpu.memory_space<vmem>>, vector<1x32xf32>
    %cst = arith.constant dense<0.000000e+00> : vector<256x32xf32>
    %20 = tpu.matmul %17, %18, %cst {dimension_numbers = #tpu.dot_dimension_numbers<[1], [0], [0], [1], [0, 0, 1, 1], [], []>} : vector<256x32xf32>, vector<32x32xf32>, vector<256x32xf32> -> vector<256x32xf32>
    %21 = vector.broadcast %19 : vector<1x32xf32> to vector<256x32xf32>
    %22 = arith.addf %20, %21 : vector<256x32xf32>
    %23 = math.tanh %22 : vector<256x32xf32>
    %c0_9 = arith.constant 0 : index
    %c0_10 = arith.constant 0 : index
    %24 = vector.load %arg6[%c0_9, %c0_10] : memref<32x32xf32, #tpu.memory_space<vmem>>, vector<32x32xf32>
    %c0_11 = arith.constant 0 : index
    %c0_12 = arith.constant 0 : index
    %25 = vector.load %arg7[%c0_11, %c0_12] : memref<1x32xf32, #tpu.memory_space<vmem>>, vector<1x32xf32>
    %cst_13 = arith.constant dense<0.000000e+00> : vector<256x32xf32>
    %26 = tpu.matmul %23, %24, %cst_13 {dimension_numbers = #tpu.dot_dimension_numbers<[1], [0], [0], [1], [0, 0, 1, 1], [], []>} : vector<256x32xf32>, vector<32x32xf32>, vector<256x32xf32> -> vector<256x32xf32>
    %27 = vector.broadcast %25 : vector<1x32xf32> to vector<256x32xf32>
    %28 = arith.addf %26, %27 : vector<256x32xf32>
    %29 = math.tanh %28 : vector<256x32xf32>
    %c0_14 = arith.constant 0 : index
    %c0_15 = arith.constant 0 : index
    %30 = vector.load %arg8[%c0_14, %c0_15] : memref<32x128xf32, #tpu.memory_space<vmem>>, vector<32x128xf32>
    %c0_16 = arith.constant 0 : index
    %c0_17 = arith.constant 0 : index
    %31 = vector.load %arg9[%c0_16, %c0_17] : memref<1x128xf32, #tpu.memory_space<vmem>>, vector<1x128xf32>
    %cst_18 = arith.constant dense<0.000000e+00> : vector<256x128xf32>
    %32 = tpu.matmul %29, %30, %cst_18 {dimension_numbers = #tpu.dot_dimension_numbers<[1], [0], [0], [1], [0, 0, 1, 1], [], []>} : vector<256x32xf32>, vector<32x128xf32>, vector<256x128xf32> -> vector<256x128xf32>
    %33 = vector.broadcast %31 : vector<1x128xf32> to vector<256x128xf32>
    %34 = arith.addf %32, %33 : vector<256x128xf32>
    %c0_19 = arith.constant 0 : index
    %c0_20 = arith.constant 0 : index
    %35 = vector.load %arg10[%c0_19, %c0_20] : memref<256x128xf32, #tpu.memory_space<vmem>>, vector<256x128xf32>
    tpu.vector_store %arg10[%c0_19, %c0_20], %34 {strides = array<i32>} : memref<256x128xf32, #tpu.memory_space<vmem>>, vector<256x128xf32>,
    return
  }
  func.func @transform_0(%arg0: i32) -> (i32, i32) {
    %c0_i32 = arith.constant 0 : i32
    %c0_i32_0 = arith.constant 0 : i32
    return %arg0, %c0_i32 : i32, i32
  }
  func.func @transform_1(%arg0: i32) -> (i32, i32) {
    %c0_i32 = arith.constant 0 : i32
    %c0_i32_0 = arith.constant 0 : i32
    %c0_i32_1 = arith.constant 0 : i32
    return %c0_i32, %c0_i32_0 : i32, i32
  }
  func.func @transform_2(%arg0: i32) -> (i32, i32) {
    %c0_i32 = arith.constant 0 : i32
    %c0_i32_0 = arith.constant 0 : i32
    %c0_i32_1 = arith.constant 0 : i32
    return %c0_i32, %c0_i32_0 : i32, i32
  }
  func.func @transform_3(%arg0: i32) -> (i32, i32) {
    %c0_i32 = arith.constant 0 : i32
    %c0_i32_0 = arith.constant 0 : i32
    %c0_i32_1 = arith.constant 0 : i32
    return %c0_i32, %c0_i32_0 : i32, i32
  }
  func.func @transform_4(%arg0: i32) -> (i32, i32) {
    %c0_i32 = arith.constant 0 : i32
    %c0_i32_0 = arith.constant 0 : i32
    %c0_i32_1 = arith.constant 0 : i32
    return %c0_i32, %c0_i32_0 : i32, i32
  }
  func.func @transform_5(%arg0: i32) -> (i32, i32) {
    %c0_i32 = arith.constant 0 : i32
    %c0_i32_0 = arith.constant 0 : i32
    %c0_i32_1 = arith.constant 0 : i32
    return %c0_i32, %c0_i32_0 : i32, i32
  }
  func.func @transform_6(%arg0: i32) -> (i32, i32) {
    %c0_i32 = arith.constant 0 : i32
    %c0_i32_0 = arith.constant 0 : i32
    %c0_i32_1 = arith.constant 0 : i32
    return %c0_i32, %c0_i32_0 : i32, i32
  }
  func.func @transform_7(%arg0: i32) -> (i32, i32) {
    %c0_i32 = arith.constant 0 : i32
    %c0_i32_0 = arith.constant 0 : i32
    %c0_i32_1 = arith.constant 0 : i32
    return %c0_i32, %c0_i32_0 : i32, i32
  }
  func.func @transform_8(%arg0: i32) -> (i32, i32) {
    %c0_i32 = arith.constant 0 : i32
    %c0_i32_0 = arith.constant 0 : i32
    %c0_i32_1 = arith.constant 0 : i32
    return %c0_i32, %c0_i32_0 : i32, i32
  }
  func.func @transform_9(%arg0: i32) -> (i32, i32) {
    %c0_i32 = arith.constant 0 : i32
    %c0_i32_0 = arith.constant 0 : i32
    return %arg0, %c0_i32 : i32, i32
  }
}

</mosaic_0001>

<bundles_post_ra>
// kernel: tpu_custom_call.1
= control target key start
LH: loop header
LB: loop body
LE: loop exit
PB: predicated region body
PF: predicated region fallthrough
CT: control target
= control target key end

     0   :  { %14 = vsyncpa [#allocation3], 0  ;;  %s3375_s0 = inlined_call_operand.vmem [shape: f32[512,2], index: 0, kind: input, shape index: {}]   ;;  %s3376_s1 = inlined_call_operand.vmem [shape: f32[2,32], index: 1, kind: input, shape index: {}]   ;;  %s3377_s2 = inlined_call_operand.vmem [shape: f32[1,32], index: 2, kind: input, shape index: {}]   ;;  %s3378_s3 = inlined_call_operand.vmem [shape: f32[32,32], index: 3, kind: input, shape index: {}]   ;;  %s3379_s4 = inlined_call_operand.vmem [shape: f32[1,32], index: 4, kind: input, shape index: {}]   ;;  %s3380_s5 = inlined_call_operand.vmem [shape: f32[32,32], index: 5, kind: input, shape index: {}]   ;;  %s3381_s6 = inlined_call_operand.vmem [shape: f32[1,32], index: 6, kind: input, shape index: {}]   ;;  %s3382_s7 = inlined_call_operand.vmem [shape: f32[32,128], index: 7, kind: input, shape index: {}]   ;;  %s3383_s8 = inlined_call_operand.vmem [shape: f32[1,128], index: 8, kind: input, shape index: {}]   ;;  %s3384_s9 = inlined_call_operand.hbm [shape: f32[512,128], index: 9, kind: output, shape index: {}]  }
   0x1   :  { %16 = vsyncpa [#allocation3 + $0x1], 0  ;;  %s2782_s30 = smov 0   ;;  %s2784_s10 = smov 0  }
   0x2   :  { %s2786_s11 = smov 0   ;;  %s2788_s12 = smov 0  }
   0x3 LB: > { %s2803_s13 = sadd.s32 4294967295, %s2725_s12   ;;  %s1999_s14 = sadd.s32 4294967294, %s2725_s12   ;;  %s2725_s12 = sphi %s2788_s12, %s3390_s12   ;;  %s2721_s11 = sphi %s2786_s11, %s3389_s11   ;;  %s2717_s10 = sphi %s2784_s10, %s3388_s10   ;;  %s2713_s30 = sphi %s2782_s30, %s3387_s30  }
   0x4   : > { %s2807_s15 = sadd.s32 1, %s2725_s12   ;;  %s223_s16 = sadd.s32 1, %s2721_s11 }
   0x5   : > { %s220_s17 = ssub.s32 %s2725_s12, %s2807_s15  ;;  %p233_p0 = scmp.ne.s32.totalorder %s2721_s11, %s2717_s10 }
   0x6   : > { %p221_p1 = scmp.eq.s32.totalorder %s220_s17, 0  ;;  %p234_p2 = scmp.eq.s32.totalorder %s2803_s13, 1 }
   0x7   : > { %p239_p3 = scmp.ne.s32.totalorder %s2717_s10, %s2713_s30  ;;  %p240_p4 = scmp.eq.s32.totalorder %s1999_s14, 1 }
   0x8   : > { %s2818_s18 = scalar_select %p221_p1, %s2721_s11, %s223_s16  }
   0x9   : > { %p2820_p5 = por %p234_p2, %p233_p0  ;;  %p2824_p6 = por %p240_p4, %p239_p3 }
   0xa   : > { %p2002_p7 = scmp.ge.s32.totalorder %s2725_s12, 1  ;;  %p291_p8 = scmp.lt.s32.totalorder %s2725_s12, 3 }
   0xc   : > { %p292_p9 = pnand %p2002_p7, %p291_p8 }
   0xd   : > { %s2004_s21 = sshll.u32 (!%p292_p9), %s2803_s13, 5  ;;  %s2111_s27 = sshll.u32 (!%p292_p9), %s2803_s13, 12 }
   0xe   : > { %295 = sbr.rel (%p292_p9) target bundleno = 982 (0x3d6), region = 56  ;;  %p328_p10 = scmp.lt.s32.totalorder (!%p292_p9), %s2004_s21, 63 }
   0xf   : > { %s3326_s16 = scalar_lea.hbm (!%p292_p9), %s3384_s9, %s2111_s27 }
  0x13   : > { %v2727_v0 = vmov 1   ;;  %s3392_s21 = smov (!%p328_p10, %s2004_s21), 63  ;;  %v2728_v7 = vmov 0   ;;  %v833_v16 = vld [vmem:[%s3378_s3 + $0x18] sm:$0xff]  ;;  %v832_v17 = vld [vmem:[%s3378_s3 + $0x10] sm:$0xff]  ;;  %v831_v18 = vld [vmem:[%s3378_s3 + $0x8] sm:$0xff]  ;;  %v534_v43 = vlaneseq }
  0x14   : > { %2441 = vset.pattern.permute.xlu0 %v2727_v0  ;;  %2439 = vset.pattern.permute.xlu1 %v2727_v0  ;;  %s2005_s22 = sshll.u32 %s3392_s21, 3  ;;  %v830_v20 = vld [vmem:[%s3378_s3] sm:$0xff]  ;;  %vm841_vm0 = vcmask 261120   ;;  %s2729_s21 = smov [#allocation2]  }
  0x15   : > { %s2836_s25 = scalar_lea.vmem %s3375_s0, %s2005_s22  ;;  %2220 = vmatprep.subr.mxu0 %v833_v16  ;;  %2388 = vmatprep.subr.mxu1 %v833_v16  ;;  %v535_v46 = vshrl.u32 %v534_v43, 7  ;;  %v366_v52 = vld [vmem:[%s3376_s1] sm:$0x3]  ;;  %s324_s22 = sand.u32 1, %s2717_s10  }
  0x16   : > { %v336_v1 = vld [vmem:[%s2836_s25 + $0x10] sm:$0xff]  ;;  %v334_v2 = vld [vmem:[%s2836_s25] sm:$0xff]  ;;  %v335_v4 = vld [vmem:[%s2836_s25 + $0x8] sm:$0xff]  ;;  %2221 = vmatpush3.msra.mxu0 %v833_v16  ;;  %2392 = vmatpush3.msra.mxu1 %v833_v16  ;;  %s2003_s23 = sshll.u32 %s324_s22, 8  ;;  %s3335_s13 = scalar_lea.sflag [#allocation3], %s324_s22 }
  0x17   : > { %611 = vperm.xlu0 %2441, %v336_v1   ;;  %603 = vperm.xlu1 %2439, %v334_v2   ;;  %v340_v3 = vld [vmem:[%s2836_s25 + $0x30] sm:$0xff]  ;;  %v337_v6 = vld [vmem:[%s2836_s25 + $0x18] sm:$0xff]  ;;  %v338_v10 = vld [vmem:[%s2836_s25 + $0x20] sm:$0xff]  ;;  %v732_v48 = vsub.s32 1, %v535_v46  ;;  %v536_v49 = vsub.s32 0, %v535_v46 }
  0x18   : > { %v344_v5 = vld [vmem:[%s2836_s25 + $0x50] sm:$0xff]  ;;  %v339_v13 = vld [vmem:[%s2836_s25 + $0x28] sm:$0xff]  ;;  %v341_v14 = vld [vmem:[%s2836_s25 + $0x38] sm:$0xff]  ;;  %2222 = vmatprep.subr.mxu0 %v832_v17  ;;  %2389 = vmatprep.subr.mxu1 %v832_v17 }
  0x19   : > { %v348_v8 = vld [vmem:[%s2836_s25 + $0x70] sm:$0xff]  ;;  %v342_v15 = vld [vmem:[%s2836_s25 + $0x40] sm:$0xff]  ;;  %2223 = vmatpush3.msra.mxu0 %v832_v17  ;;  %v343_v19 = vld [vmem:[%s2836_s25 + $0x48] sm:$0xff]  ;;  %2393 = vmatpush3.msra.mxu1 %v832_v17  ;;  %v2936_v54 = vrot.slane %v366_v52, %v732_v48  ;;  %v2938_v55 = vrot.slane %v366_v52, %v536_v49 }
  0x1a   : > { %v2848_v9 = vld [vmem:[%s2836_s25 + $0x90] sm:$0xff]  ;;  %2224 = vmatprep.subr.mxu0 %v831_v18  ;;  %2390 = vmatprep.subr.mxu1 %v831_v18  ;;  %v347_v21 = vld [vmem:[%s2836_s25 + $0x68] sm:$0xff]  ;;  %v345_v22 = vld [vmem:[%s2836_s25 + $0x58] sm:$0xff] }
  0x1b   : > { %627 = vperm.xlu0 %2441, %v340_v3   ;;  %607 = vperm.xlu1 %2439, %v335_v4   ;;  %v2853_v11 = vld [vmem:[%s2836_s25 + $0xb0] sm:$0xff]  ;;  %v351_v23 = vld [vmem:[%s2836_s25 + $0x88] sm:$0xff]  ;;  %v346_v24 = vld [vmem:[%s2836_s25 + $0x60] sm:$0xff] }
  0x1c   : > { %v2858_v12 = vld [vmem:[%s2836_s25 + $0xd0] sm:$0xff]  ;;  %2225 = vmatpush3.msra.mxu0 %v831_v18  ;;  %2394 = vmatpush3.msra.mxu1 %v831_v18  ;;  %v355_v25 = vld [vmem:[%s2836_s25 + $0xa8] sm:$0xff]  ;;  %v349_v27 = vld [vmem:[%s2836_s25 + $0x78] sm:$0xff] }
  0x1d   : > { %2226 = vmatprep.subr.mxu0 %v830_v20  ;;  %2391 = vmatprep.subr.mxu1 %v830_v20  ;;  %v359_v26 = vld [vmem:[%s2836_s25 + $0xc8] sm:$0xff]  ;;  %v350_v29 = vld [vmem:[%s2836_s25 + $0x80] sm:$0xff]  ;;  %v364_v30 = vld [vmem:[%s2836_s25 + $0xf0] sm:$0xff] }
  0x1e   : > { %2227 = vmatpush3.msra.mxu0 %v830_v20  ;;  %2395 = vmatpush3.msra.mxu1 %v830_v20  ;;  %v2900_v28 = vld [vmem:[%s2836_s25 + $0xe8] sm:$0xff]  ;;  %v353_v31 = vld [vmem:[%s2836_s25 + $0x98] sm:$0xff]  ;;  %v354_v32 = vld [vmem:[%s2836_s25 + $0xa0] sm:$0xff] }
  0x1f   : > { %643 = vperm.xlu0 %2441, %v344_v5   ;;  %2440 = vset.pattern.permute.xlu1 %v2728_v7  ;;  %v357_v35 = vld [vmem:[%s2836_s25 + $0xb8] sm:$0xff]  ;;  %v358_v41 = vld [vmem:[%s2836_s25 + $0xc0] sm:$0xff] }
  0x20   : > { %391 = vperm.xlu1 %2440, %v337_v6   ;;  %v361_v53 = vld [vmem:[%s2836_s25 + $0xd8] sm:$0xff]  ;;  %v2945_v59 = vld [vmem:[%s3377_s2] ss:$0 sm:$0xff] }
  0x23   : > { %659 = vperm.xlu0 %2441, %v348_v8  }
  0x24   : > { %2442 = vset.pattern.permute.xlu1 %v2727_v0 }
  0x25   : > { %615 = vperm.xlu1 %2442, %v337_v6  }
  0x27   : > { %675 = vperm.xlu0 %2441, %v2848_v9  }
  0x29   : > { %2443 = vset.pattern.permute.xlu1 %v2728_v7 }
  0x2a   : > { %396 = vperm.xlu1 %2443, %v338_v10  }
  0x2b   : > { %691 = vperm.xlu0 %2441, %v2853_v11  }
  0x2e   : > { %2444 = vset.pattern.permute.xlu1 %v2727_v0 }
  0x2f   : > { %707 = vperm.xlu0 %2441, %v2858_v12   ;;  %619 = vperm.xlu1 %2444, %v338_v10   ;;  %v362_v10 = vld [vmem:[%s2836_s25 + $0xe0] sm:$0xff] }
  0x33   : > { %2466 = vset.pattern.permute.xlu0 %v2728_v7  ;;  %623 = vperm.xlu1 %2444, %v339_v13  }
  0x34   : > { %376 = vperm.xlu0 %2466, %v334_v2  }
  0x37   : > { %2445 = vset.pattern.permute.xlu1 %v2728_v7 }
  0x38   : > { %381 = vperm.xlu0 %2466, %v335_v4   ;;  %411 = vperm.xlu1 %2445, %v341_v14  }
  0x3c   : > { %386 = vperm.xlu0 %2466, %v336_v1   ;;  %2446 = vset.pattern.permute.xlu1 %v2727_v0 }
  0x3d   : > { %631 = vperm.xlu1 %2446, %v341_v14  }
  0x40   : > { %401 = vperm.xlu0 %2466, %v339_v13  }
  0x41   : > { %2447 = vset.pattern.permute.xlu1 %v2728_v7 }
  0x42   : > { %416 = vperm.xlu1 %2447, %v342_v15  }
  0x44   : > { %406 = vperm.xlu0 %2466, %v340_v3  }
  0x46   : > { %2448 = vset.pattern.permute.xlu1 %v2727_v0 }
  0x47   : > { %635 = vperm.xlu1 %2448, %v342_v15  }
  0x48   : > { %421 = vperm.xlu0 %2466, %v343_v19  }
  0x4b   : > { %639 = vperm.xlu1 %2448, %v343_v19  }
  0x4c   : > { %426 = vperm.xlu0 %2466, %v344_v5  }
  0x4f   : > { %2449 = vset.pattern.permute.xlu1 %v2728_v7 }
  0x50   : > { %441 = vperm.xlu0 %2466, %v347_v21   ;;  %431 = vperm.xlu1 %2449, %v345_v22  }
  0x54   : > { %446 = vperm.xlu0 %2466, %v348_v8   ;;  %2450 = vset.pattern.permute.xlu1 %v2727_v0 }
  0x55   : > { %647 = vperm.xlu1 %2450, %v345_v22  }
  0x58   : > { %461 = vperm.xlu0 %2466, %v351_v23  }
  0x59   : > { %2451 = vset.pattern.permute.xlu1 %v2728_v7 }
  0x5a   : > { %436 = vperm.xlu1 %2451, %v346_v24  }
  0x5c   : > { %466 = vperm.xlu0 %2466, %v2848_v9  }
  0x5e   : > { %2452 = vset.pattern.permute.xlu1 %v2727_v0 }
  0x5f   : > { %651 = vperm.xlu1 %2452, %v346_v24  }
  0x60   : > { %481 = vperm.xlu0 %2466, %v355_v25  }
  0x63   : > { %655 = vperm.xlu1 %2452, %v347_v21  }
  0x64   : > { %486 = vperm.xlu0 %2466, %v2853_v11  }
  0x67   : > { %2453 = vset.pattern.permute.xlu1 %v2728_v7 }
  0x68   : > { %501 = vperm.xlu0 %2466, %v359_v26   ;;  %451 = vperm.xlu1 %2453, %v349_v27  }
  0x6c   : > { %506 = vperm.xlu0 %2466, %v2858_v12   ;;  %2454 = vset.pattern.permute.xlu1 %v2727_v0 }
  0x6d   : > { %663 = vperm.xlu1 %2454, %v349_v27  }
  0x70   : > { %521 = vperm.xlu0 %2466, %v2900_v28  }
  0x71   : > { %2455 = vset.pattern.permute.xlu1 %v2728_v7 }
  0x72   : > { %456 = vperm.xlu1 %2455, %v350_v29  }
  0x74   : > { %526 = vperm.xlu0 %2466, %v364_v30  }
  0x76   : > { %2456 = vset.pattern.permute.xlu1 %v2727_v0 }
  0x77   : > { %667 = vperm.xlu1 %2456, %v350_v29  }
  0x78   : > { %2471 = vset.pattern.permute.xlu0 %v2727_v0 }
  0x79   : > { %723 = vperm.xlu0 %2471, %v364_v30  }
  0x7b   : > { %671 = vperm.xlu1 %2456, %v351_v23  }
  0x7f   : > { %2457 = vset.pattern.permute.xlu1 %v2728_v7 }
  0x80   : > { %471 = vperm.xlu1 %2457, %v353_v31  }
  0x84   : > { %2458 = vset.pattern.permute.xlu1 %v2727_v0 }
  0x85   : > { %679 = vperm.xlu1 %2458, %v353_v31  }
  0x89   : > { %2459 = vset.pattern.permute.xlu1 %v2728_v7 }
  0x8a   : > { %476 = vperm.xlu1 %2459, %v354_v32  }
  0x8e   : > { %2460 = vset.pattern.permute.xlu1 %v2727_v0 }
  0x8f   : > { %683 = vperm.xlu1 %2460, %v354_v32  }
  0x92   : > { %v604_v33 = vpop.permute.xlu1 %603  ;;  %v612_v34 = vpop.permute.xlu0 %611 }
  0x93   : > { %687 = vperm.xlu1 %2460, %v355_v25   ;;  %v734_v60 = vmul.f32 %v2936_v54, %v604_v33  ;;  %v736_v11 = vmul.f32 %v2936_v54, %v612_v34 }
  0x96   : > { %v608_v36 = vpop.permute.xlu1 %607  ;;  %v2915_v37 = vpop.permute.xlu0 %627 }
  0x97   : > { %2461 = vset.pattern.permute.xlu1 %v2728_v7  ;;  %v735_v4 = vmul.f32 %v2936_v54, %v608_v36  ;;  %v740_v33 = vmul.f32 %v2936_v54, %v2915_v37 }
  0x98   : > { %491 = vperm.xlu1 %2461, %v357_v35  }
  0x9a   : > { %v2918_v38 = vpop.permute.xlu0 %643 }
  0x9b   : > { %v392_v39 = vpop.permute.xlu1 %391 }
  0x9c   : > { %2462 = vset.pattern.permute.xlu1 %v2727_v0  ;;  %v541_v3 = vmul.f32 %v2938_v55, %v392_v39 }
  0x9d   : > { %695 = vperm.xlu1 %2462, %v357_v35  }
  0x9e   : > { %v2921_v40 = vpop.permute.xlu0 %659  ;;  %v573_v16 = vadd.f32 %v2945_v59, %v541_v3 }
  0xa0   : > { %v616_v42 = vpop.permute.xlu1 %615 }
  0xa1   : > { %2463 = vset.pattern.permute.xlu1 %v2728_v7  ;;  %v737_v8 = vmul.f32 %v2936_v54, %v616_v42 }
  0xa2   : > { %496 = vperm.xlu1 %2463, %v358_v41   ;;  %v2925_v44 = vpop.permute.xlu0 %675 }
  0xa3   : > { %v769_v19 = vadd.f32 %v737_v8, %v573_v16 }
  0xa5   : > { %v397_v45 = vpop.permute.xlu1 %396 }
  0xa6   : > { %2464 = vset.pattern.permute.xlu1 %v2727_v0  ;;  %v2928_v47 = vpop.permute.xlu0 %691  ;;  %v542_v5 = vmul.f32 %v2938_v55, %v397_v45 }
  0xa7   : > { %699 = vperm.xlu1 %2464, %v358_v41  }
  0xa8   : > { %v574_v17 = vadd.f32 %v2945_v59, %v542_v5 }
  0xaa   : > { %v620_v50 = vpop.permute.xlu1 %619  ;;  %v2930_v51 = vpop.permute.xlu0 %707 }
  0xab   : > { %703 = vperm.xlu1 %2464, %v359_v26   ;;  %v738_v12 = vmul.f32 %v2936_v54, %v620_v50  ;;  %v365_v50 = vld [vmem:[%s2836_s25 + $0xf8] sm:$0xff]  ;;  %s3259_s25 = scalar_lea.vmem [#allocation2], %s2003_s23  ;;  %s2669_s23 = sshll.u32 %s2729_s21, 4  ;;  %s2670_s23 = int_to_ptr.vmem [resolvable:$false] %s2669_s23 }
  0xac   : > { %s1937_s28 = sshll.u32 %s3259_s25, 4  ;;  %s2671_s24 = scalar_lea.vmem %s2670_s23, 8192  ;;  %s3328_s28 = int_to_ptr.vmem [resolvable:$true] %s1937_s28 }
  0xad   : > { %v770_v22 = vadd.f32 %v738_v12, %v574_v17  ;;  %s2665_s17 = scalar_lea.vmem %s3328_s28, 4096  ;;  %p2672_p0 = scmp.lt.s32.totalorder %s3328_s28, %s2670_s23 }
  0xae   : > { %v624_v56 = vpop.permute.xlu1 %623  ;;  %p2666_p11 = scmp.ne.s32.totalorder %s3328_s28, %s2665_s17  ;;  %p2673_p1 = scmp.lt.s32.totalorder %s2671_s24, %s2665_s17 }
  0xaf   : > { %v377_v57 = vpop.permute.xlu0 %376  ;;  %2465 = vset.pattern.permute.xlu1 %v2728_v7  ;;  %v739_v27 = vmul.f32 %v2936_v54, %v624_v56 }
  0xb0   : > { %v538_v58 = vmul.f32 %v2938_v55, %v377_v57  ;;  %511 = vperm.xlu1 %2465, %v361_v53   ;;  %p2667_p12 = pnand %p2666_p11, %p2820_p5  ;;  %p2674_p2 = por %p2673_p1, %p2672_p0 }
  0xb2   : > { %v570_v61 = vadd.f32 %v2945_v59, %v538_v58  ;;  %p2668_p13 = pneg %p2667_p12 }
  0xb3   : > { %v382_v62 = vpop.permute.xlu0 %381  ;;  %v412_v63 = vpop.permute.xlu1 %411 }
  0xb4   : > { %v766_v1 = vadd.f32 %v734_v60, %v570_v61  ;;  %v539_v2 = vmul.f32 %v2938_v55, %v382_v62  ;;  %2467 = vset.pattern.permute.xlu1 %v2727_v0  ;;  %v545_v20 = vmul.f32 %v2938_v55, %v412_v63  ;;  %p2675_p3 = pnand %p2674_p2, %p2668_p13 }
  0xb5   : > { %711 = vperm.xlu1 %2467, %v361_v53  }
  0xb6   : > { %2473 = vtanh.f32 %v766_v1  ;;  %v571_v6 = vadd.f32 %v2945_v59, %v539_v2  ;;  %v577_v30 = vadd.f32 %v2945_v59, %v545_v20 }
  0xb7   : > { %v387_v9 = vpop.permute.xlu0 %386 }
  0xb8   : > { %v767_v13 = vadd.f32 %v735_v4, %v571_v6  ;;  %v540_v14 = vmul.f32 %v2938_v55, %v387_v9  ;;  %v632_v15 = vpop.permute.xlu1 %631 }
  0xb9   : > { %2468 = vset.pattern.permute.xlu1 %v2728_v7  ;;  %v741_v25 = vmul.f32 %v2936_v54, %v632_v15 }
  0xba   : > { %2475 = vtanh.f32 %v767_v13  ;;  %v572_v18 = vadd.f32 %v2945_v59, %v540_v14  ;;  %516 = vperm.xlu1 %2468, %v362_v10  }
  0xbb   : > { %v402_v21 = vpop.permute.xlu0 %401  ;;  %v773_v36 = vadd.f32 %v741_v25, %v577_v30 }
  0xbc   : > { %v768_v23 = vadd.f32 %v736_v11, %v572_v18  ;;  %v543_v24 = vmul.f32 %v2938_v55, %v402_v21 }
  0xbd   : > { %v417_v26 = vpop.permute.xlu1 %416 }
  0xbe   : > { %2477 = vtanh.f32 %v768_v23  ;;  %v575_v29 = vadd.f32 %v2945_v59, %v543_v24  ;;  %2469 = vset.pattern.permute.xlu1 %v2727_v0  ;;  %v546_v31 = vmul.f32 %v2938_v55, %v417_v26 }
  0xbf   : > { %2479 = vtanh.f32 %v769_v19  ;;  %v407_v32 = vpop.permute.xlu0 %406  ;;  %715 = vperm.xlu1 %2469, %v362_v10   ;;  %v748_v19 = vmul.f32 %v2936_v54, %v2921_v40 }
  0xc0   : > { %2481 = vtanh.f32 %v770_v22  ;;  %v771_v34 = vadd.f32 %v739_v27, %v575_v29  ;;  %v544_v35 = vmul.f32 %v2938_v55, %v407_v32  ;;  %v578_v43 = vadd.f32 %v2945_v59, %v546_v31 }
  0xc2   : > { %2483 = vtanh.f32 %v771_v34  ;;  %v576_v39 = vadd.f32 %v2945_v59, %v544_v35  ;;  %v636_v41 = vpop.permute.xlu1 %635 }
  0xc3   : > { %v2474_v42 = vpop.eup %2473  ;;  %v742_v45 = vmul.f32 %v2936_v54, %v636_v41  ;;  %v422_v46 = vpop.permute.xlu0 %421  ;;  %719 = vperm.xlu1 %2469, %v2900_v28   ;;  %2485 = vtanh.f32 %v773_v36  ;;  %v744_v28 = vmul.f32 %v2936_v54, %v2918_v38 }
  0xc4   : > { %v772_v37 = vadd.f32 %v740_v33, %v576_v39  ;;  %v547_v48 = vmul.f32 %v2938_v55, %v422_v46  ;;  %2228 = vmatprep.mubr.msk.f32.mxu0 %vm841_vm0, %v2474_v42 }
  0xc5   : > { %v774_v49 = vadd.f32 %v742_v45, %v578_v43 }
  0xc6   : > { %2487 = vtanh.f32 %v772_v37  ;;  %v579_v52 = vadd.f32 %v2945_v59, %v547_v48  ;;  %v640_v53 = vpop.permute.xlu1 %639 }
  0xc7   : > { %v2476_v56 = vpop.eup %2475  ;;  %2489 = vtanh.f32 %v774_v49  ;;  %v743_v57 = vmul.f32 %v2936_v54, %v640_v53  ;;  %v427_v58 = vpop.permute.xlu0 %426  ;;  %2470 = vset.pattern.permute.xlu1 %v2728_v7 }
  0xc8   : > { %v548_v60 = vmul.f32 %v2938_v55, %v427_v58  ;;  %531 = vperm.xlu1 %2470, %v365_v50   ;;  %2229 = vmatmul.mubr.msk.f32.vlgmr.msra.gmra.mxu0 %vm841_vm0, %v2476_v56 }
  0xc9   : > { %v775_v61 = vadd.f32 %v743_v57, %v579_v52  ;;  %v752_v57 = vmul.f32 %v2936_v54, %v2925_v44 }
  0xca   : > { %v580_v62 = vadd.f32 %v2945_v59, %v548_v60 }
  0xcb   : > { %v2478_v63 = vpop.eup %2477  ;;  %2491 = vtanh.f32 %v775_v61  ;;  %v432_v1 = vpop.permute.xlu1 %431 }
  0xcc   : > { %v2480_v2 = vpop.eup %2479  ;;  %v776_v3 = vadd.f32 %v744_v28, %v580_v62  ;;  %2472 = vset.pattern.permute.xlu1 %v2727_v0  ;;  %2231 = vmatprep.mubr.msk.f32.mxu0 %vm841_vm0, %v2478_v63  ;;  %v549_v38 = vmul.f32 %v2938_v55, %v432_v1  ;;  %v442_v5 = vpop.permute.xlu0 %441 }
  0xcd   : > { %v2482_v7 = vpop.eup %2481  ;;  %727 = vperm.xlu1 %2472, %v365_v50   ;;  %2232 = vmatmul.mubr.msk.f32.gmra.mxu0 %vm841_vm0, %v2480_v2  ;;  %v551_v18 = vmul.f32 %v2938_v55, %v442_v5 }
  0xce   : > { %2493 = vtanh.f32 %v776_v3  ;;  %2234 = vmatprep.mubr.msk.f32.mxu0 %vm841_vm0, %v2482_v7  ;;  %v581_v8 = vadd.f32 %v2945_v59, %v549_v38 }
  0xcf   : > { %v2484_v4 = vpop.eup %2483  ;;  %v583_v25 = vadd.f32 %v2945_v59, %v551_v18  ;;  %v756_v18 = vmul.f32 %v2936_v54, %v2928_v47  ;;  %v1198_v47 = vld [vmem:[%s3380_s5 + $0x18] sm:$0xff] }
  0xd0   : > { %v648_v6 = vpop.permute.xlu1 %647  ;;  %v2486_v0 = vpop.eup %2485  ;;  %2276 = vmatprep.subr.mxu1 %v1198_v47 }
  0xd1   : > { %v745_v9 = vmul.f32 %v2936_v54, %v648_v6  ;;  %2235 = vmatmul.mubr.msk.f32.gmra.mxu0 %vm841_vm0, %v2484_v4  ;;  %v447_v13 = vpop.permute.xlu0 %446 }
  0xd2   : > { %v552_v15 = vmul.f32 %v2938_v55, %v447_v13 }
  0xd3   : > { %v2488_v10 = vpop.eup %2487  ;;  %v777_v11 = vadd.f32 %v745_v9, %v581_v8 }
  0xd4   : > { %v2490_v12 = vpop.eup %2489  ;;  %2237 = vmatprep.mubr.msk.f32.mxu0 %vm841_vm0, %v2488_v10  ;;  %v584_v20 = vadd.f32 %v2945_v59, %v552_v15 }
  0xd5   : > { %2495 = vtanh.f32 %v777_v11  ;;  %2238 = vmatmul.mubr.msk.f32.gmra.mxu0 %vm841_vm0, %v2486_v0  ;;  %v437_v14 = vpop.permute.xlu1 %436  ;;  %v462_v35 = vpop.permute.xlu0 %461 }
  0xd6   : > { %2240 = vmatprep.mubr.msk.f32.mxu0 %vm841_vm0, %v2490_v12  ;;  %v550_v16 = vmul.f32 %v2938_v55, %v437_v14  ;;  %v780_v27 = vadd.f32 %v748_v19, %v584_v20  ;;  %v555_v50 = vmul.f32 %v2938_v55, %v462_v35  ;;  %v1195_v35 = vld [vmem:[%s3380_s5] sm:$0xff] }
  0xd8   : > { %v2492_v17 = vpop.eup %2491  ;;  %v582_v23 = vadd.f32 %v2945_v59, %v550_v16  ;;  %v587_v28 = vadd.f32 %v2945_v59, %v555_v50 }
  0xd9   : > { %2241 = vmatmul.mubr.msk.f32.gmra.mxu0 %vm841_vm0, %v2492_v17  ;;  %v467_v46 = vpop.permute.xlu0 %466 }
  0xda   : > { %v652_v21 = vpop.permute.xlu1 %651  ;;  %v556_v49 = vmul.f32 %v2938_v55, %v467_v46 }
  0xdb   : > { %v2494_v22 = vpop.eup %2493  ;;  %v746_v24 = vmul.f32 %v2936_v54, %v652_v21 }
  0xdc   : > { %2243 = vmatprep.mubr.msk.f32.mxu0 %vm841_vm0, %v2494_v22  ;;  %v588_v58 = vadd.f32 %v2945_v59, %v556_v49 }
  0xdd   : > { %v778_v26 = vadd.f32 %v746_v24, %v582_v23  ;;  %v482_v38 = vpop.permute.xlu0 %481 }
  0xde   : > { %v656_v29 = vpop.permute.xlu1 %655  ;;  %v784_v63 = vadd.f32 %v752_v57, %v588_v58  ;;  %v559_v15 = vmul.f32 %v2938_v55, %v482_v38  ;;  %v760_v57 = vmul.f32 %v2936_v54, %v2930_v51 }
  0xdf   : > { %2497 = vtanh.f32 %v778_v26  ;;  %v747_v30 = vmul.f32 %v2936_v54, %v656_v29 }
  0xe0   : > { %2499 = vtanh.f32 %v780_v27  ;;  %v591_v22 = vadd.f32 %v2945_v59, %v559_v15 }
  0xe1   : > { %v779_v31 = vadd.f32 %v747_v30, %v583_v25  ;;  %v487_v0 = vpop.permute.xlu0 %486  ;;  %v1197_v30 = vld [vmem:[%s3380_s5 + $0x10] sm:$0xff] }
  0xe2   : > { %v2496_v40 = vpop.eup %2495  ;;  %v560_v12 = vmul.f32 %v2938_v55, %v487_v0 }
  0xe3   : > { %2501 = vtanh.f32 %v779_v31  ;;  %2244 = vmatmul.mubr.msk.f32.gmra.mxu0 %vm841_vm0, %v2496_v40  ;;  %v452_v32 = vpop.permute.xlu1 %451  ;;  %v1196_v40 = vld [vmem:[%s3380_s5 + $0x8] sm:$0xff] }
  0xe4   : > { %v553_v33 = vmul.f32 %v2938_v55, %v452_v32  ;;  %v592_v19 = vadd.f32 %v2945_v59, %v560_v12 }
  0xe5   : > { %v502_v31 = vpop.permute.xlu0 %501 }
  0xe6   : > { %v585_v36 = vadd.f32 %v2945_v59, %v553_v33  ;;  %v788_v24 = vadd.f32 %v756_v18, %v592_v19  ;;  %v563_v49 = vmul.f32 %v2938_v55, %v502_v31 }
  0xe8   : > { %v664_v34 = vpop.permute.xlu1 %663 }
  0xe9   : > { %v749_v39 = vmul.f32 %v2936_v54, %v664_v34 }
  0xeb   : > { %v781_v41 = vadd.f32 %v749_v39, %v585_v36 }
  0xec   : > { %v2498_v42 = vpop.eup %2497 }
  0xed   : > { %2503 = vtanh.f32 %v781_v41  ;;  %2246 = vmatprep.mubr.msk.f32.mxu0 %vm841_vm0, %v2498_v42  ;;  %v457_v43 = vpop.permute.xlu1 %456  ;;  %v2500_v45 = vpop.eup %2499 }
  0xee   : > { %v554_v37 = vmul.f32 %v2938_v55, %v457_v43  ;;  %v507_v41 = vpop.permute.xlu0 %506 }
  0xef   : > { %v564_v46 = vmul.f32 %v2938_v55, %v507_v41 }
  0xf0   : > { %v2502_v48 = vpop.eup %2501  ;;  %v586_v53 = vadd.f32 %v2945_v59, %v554_v37 }
  0xf1   : > { %2247 = vmatmul.mubr.msk.f32.gmra.mxu0 %vm841_vm0, %v2502_v48 }
  0xf2   : > { %v668_v52 = vpop.permute.xlu1 %667  ;;  %2249 = vmatprep.mubr.msk.f32.mxu0 %vm841_vm0, %v2500_v45 }
  0xf3   : > { %v750_v56 = vmul.f32 %v2936_v54, %v668_v52 }
  0xf5   : > { %v782_v60 = vadd.f32 %v750_v56, %v586_v53  ;;  %v596_v53 = vadd.f32 %v2945_v59, %v564_v46 }
  0xf6   : > { %v672_v61 = vpop.permute.xlu1 %671 }
  0xf7   : > { %2505 = vtanh.f32 %v782_v60  ;;  %v751_v62 = vmul.f32 %v2936_v54, %v672_v61  ;;  %v792_v61 = vadd.f32 %v760_v57, %v596_v53 }
  0xf9   : > { %v783_v1 = vadd.f32 %v751_v62, %v587_v28  ;;  %v595_v28 = vadd.f32 %v2945_v59, %v563_v49 }
  0xfa   : > { %v2504_v2 = vpop.eup %2503 }
  0xfb   : > { %2507 = vtanh.f32 %v783_v1  ;;  %2250 = vmatmul.mubr.msk.f32.gmra.mxu0 %vm841_vm0, %v2504_v2  ;;  %v472_v3 = vpop.permute.xlu1 %471  ;;  %v522_v2 = vpop.permute.xlu0 %521 }
  0xfc   : > { %2509 = vtanh.f32 %v784_v63  ;;  %v557_v7 = vmul.f32 %v2938_v55, %v472_v3 }
  0xfe   : > { %v589_v4 = vadd.f32 %v2945_v59, %v557_v7 }
  0xff   : > { %v527_v38 = vpop.permute.xlu0 %526 }
 0x100   : > { %v680_v44 = vpop.permute.xlu1 %679  ;;  %v568_v0 = vmul.f32 %v2938_v55, %v527_v38 }
 0x101   : > { %v753_v5 = vmul.f32 %v2936_v54, %v680_v44 }
 0x103   : > { %v785_v6 = vadd.f32 %v753_v5, %v589_v4 }
 0x104   : > { %v2506_v8 = vpop.eup %2505 }
 0x105   : > { %2511 = vtanh.f32 %v785_v6  ;;  %2252 = vmatprep.mubr.msk.f32.mxu1 %vm841_vm0, %v2506_v8  ;;  %v477_v9 = vpop.permute.xlu1 %476 }
 0x106   : > { %v558_v10 = vmul.f32 %v2938_v55, %v477_v9 }
 0x108   : > { %v2508_v11 = vpop.eup %2507  ;;  %v590_v16 = vadd.f32 %v2945_v59, %v558_v10 }
 0x109   : > { %v2510_v13 = vpop.eup %2509  ;;  %2253 = vmatmul.mubr.msk.f32.vlgmr.msra.gmra.mxu1 %vm841_vm0, %v2508_v11  ;;  %v724_v11 = vpop.permute.xlu0 %723 }
 0x10a   : > { %2255 = vmatprep.mubr.msk.f32.mxu1 %vm841_vm0, %v2510_v13  ;;  %v684_v14 = vpop.permute.xlu1 %683  ;;  %2277 = vmatpush3.msra.mxu1 %v1198_v47  ;;  %v567_v13 = vmul.f32 %v2938_v55, %v522_v2 }
 0x10b   : > { %v754_v17 = vmul.f32 %v2936_v54, %v684_v14  ;;  %2278 = vmatprep.subr.mxu1 %v1197_v30 }
 0x10c   : > { %2279 = vmatpush3.msra.mxu1 %v1197_v30 }
 0x10d   : > { %v786_v20 = vadd.f32 %v754_v17, %v590_v16  ;;  %2280 = vmatprep.subr.mxu1 %v1196_v40  ;;  %v600_v16 = vadd.f32 %v2945_v59, %v568_v0  ;;  %v764_v17 = vmul.f32 %v2936_v54, %v724_v11 }
 0x10e   : > { %v688_v21 = vpop.permute.xlu1 %687  ;;  %2281 = vmatpush3.msra.mxu1 %v1196_v40 }
 0x10f   : > { %2513 = vtanh.f32 %v786_v20  ;;  %v755_v23 = vmul.f32 %v2936_v54, %v688_v21  ;;  %2282 = vmatprep.subr.mxu1 %v1195_v35  ;;  %v599_v20 = vadd.f32 %v2945_v59, %v567_v13 }
 0x110   : > { %2283 = vmatpush3.msra.mxu1 %v1195_v35 }
 0x111   : > { %v787_v25 = vadd.f32 %v755_v23, %v591_v22  ;;  %v796_v22 = vadd.f32 %v764_v17, %v600_v16 }
 0x112   : > { %v2512_v26 = vpop.eup %2511 }
 0x113   : > { %2515 = vtanh.f32 %v787_v25  ;;  %2256 = vmatmul.mubr.msk.f32.gmra.mxu1 %vm841_vm0, %v2512_v26  ;;  %v492_v27 = vpop.permute.xlu1 %491 }
 0x114   : > { %2517 = vtanh.f32 %v788_v24  ;;  %v561_v29 = vmul.f32 %v2938_v55, %v492_v27 }
 0x116   : > { %v593_v33 = vadd.f32 %v2945_v59, %v561_v29 }
 0x118   : > { %v696_v32 = vpop.permute.xlu1 %695 }
 0x119   : > { %v757_v34 = vmul.f32 %v2936_v54, %v696_v32 }
 0x11b   : > { %v789_v36 = vadd.f32 %v757_v34, %v593_v33 }
 0x11c   : > { %v2514_v39 = vpop.eup %2513 }
 0x11d   : > { %2519 = vtanh.f32 %v789_v36  ;;  %2258 = vmatprep.mubr.msk.f32.mxu1 %vm841_vm0, %v2514_v39  ;;  %v497_v42 = vpop.permute.xlu1 %496 }
 0x11e   : > { %v562_v43 = vmul.f32 %v2938_v55, %v497_v42 }
 0x120   : > { %v2516_v45 = vpop.eup %2515  ;;  %v594_v50 = vadd.f32 %v2945_v59, %v562_v43 }
 0x121   : > { %v2518_v37 = vpop.eup %2517  ;;  %2259 = vmatmul.mubr.msk.f32.gmra.mxu1 %vm841_vm0, %v2516_v45 }
 0x122   : > { %2261 = vmatprep.mubr.msk.f32.mxu1 %vm841_vm0, %v2518_v37  ;;  %v700_v48 = vpop.permute.xlu1 %699 }
 0x123   : > { %v758_v52 = vmul.f32 %v2936_v54, %v700_v48 }
 0x125   : > { %v790_v56 = vadd.f32 %v758_v52, %v594_v50 }
 0x126   : > { %v704_v58 = vpop.permute.xlu1 %703 }
 0x127   : > { %2521 = vtanh.f32 %v790_v56  ;;  %v759_v60 = vmul.f32 %v2936_v54, %v704_v58 }
 0x129   : > { %v791_v62 = vadd.f32 %v759_v60, %v595_v28 }
 0x12a   : > { %v2520_v63 = vpop.eup %2519 }
 0x12b   : > { %2523 = vtanh.f32 %v791_v62  ;;  %2262 = vmatmul.mubr.msk.f32.gmra.mxu1 %vm841_vm0, %v2520_v63  ;;  %v512_v1 = vpop.permute.xlu1 %511 }
 0x12c   : > { %2525 = vtanh.f32 %v792_v61  ;;  %v565_v3 = vmul.f32 %v2938_v55, %v512_v1 }
 0x12e   : > { %v597_v51 = vadd.f32 %v2945_v59, %v565_v3 }
 0x130   : > { %v712_v7 = vpop.permute.xlu1 %711 }
 0x131   : > { %v761_v44 = vmul.f32 %v2936_v54, %v712_v7 }
 0x133   : > { %v793_v4 = vadd.f32 %v761_v44, %v597_v51 }
 0x134   : > { %v2522_v5 = vpop.eup %2521 }
 0x135   : > { %2527 = vtanh.f32 %v793_v4  ;;  %2264 = vmatprep.mubr.msk.f32.mxu1 %vm841_vm0, %v2522_v5  ;;  %v517_v6 = vpop.permute.xlu1 %516 }
 0x136   : > { %v566_v8 = vmul.f32 %v2938_v55, %v517_v6 }
 0x138   : > { %v2524_v9 = vpop.eup %2523  ;;  %v598_v14 = vadd.f32 %v2945_v59, %v566_v8 }
 0x139   : > { %v2526_v10 = vpop.eup %2525  ;;  %2265 = vmatmul.mubr.msk.f32.gmra.mxu1 %vm841_vm0, %v2524_v9 }
 0x13a   : > { %2267 = vmatprep.mubr.msk.f32.mxu1 %vm841_vm0, %v2526_v10  ;;  %v716_v12 = vpop.permute.xlu1 %715 }
 0x13b   : > { %v762_v15 = vmul.f32 %v2936_v54, %v716_v12 }
 0x13d   : > { %v794_v18 = vadd.f32 %v762_v15, %v598_v14 }
 0x13e   : > { %v720_v19 = vpop.permute.xlu1 %719 }
 0x13f   : > { %2529 = vtanh.f32 %v794_v18  ;;  %v763_v21 = vmul.f32 %v2936_v54, %v720_v19 }
 0x141   : > { %v795_v23 = vadd.f32 %v763_v21, %v599_v20 }
 0x142   : > { %v2528_v24 = vpop.eup %2527 }
 0x143   : > { %2531 = vtanh.f32 %v795_v23  ;;  %2268 = vmatmul.mubr.msk.f32.gmra.mxu1 %vm841_vm0, %v2528_v24  ;;  %v532_v25 = vpop.permute.xlu1 %531 }
 0x144   : > { %2533 = vtanh.f32 %v796_v22  ;;  %v569_v26 = vmul.f32 %v2938_v55, %v532_v25  ;;  %v3103_v55 = vld [vmem:[%s3379_s4] ss:$0 sm:$0xff] }
 0x146   : > { %v601_v47 = vadd.f32 %v2945_v59, %v569_v26 }
 0x148   : > { %v728_v27 = vpop.permute.xlu1 %727 }
 0x149   : > { %v765_v29 = vmul.f32 %v2936_v54, %v728_v27 }
 0x14b   : > { %v797_v30 = vadd.f32 %v765_v29, %v601_v47 }
 0x14c   : > { %v2530_v31 = vpop.eup %2529 }
 0x14d   : > { %2535 = vtanh.f32 %v797_v30  ;;  %2270 = vmatprep.mubr.msk.f32.mxu1 %vm841_vm0, %v2530_v31 }
 0x150   : > { %v2532_v40 = vpop.eup %2531 }
 0x151   : > { %v2534_v32 = vpop.eup %2533  ;;  %2271 = vmatmul.mubr.msk.f32.gmra.mxu1 %vm841_vm0, %v2532_v40 }
 0x152   : > { %2273 = vmatprep.mubr.msk.f32.mxu1 %vm841_vm0, %v2534_v32 }
 0x15a   : > { %v2536_v33 = vpop.eup %2535 }
 0x15b   : > { %2274 = vmatmul.mubr.msk.f32.gmra.mxu1 %vm841_vm0, %v2536_v33 }
 0x188   : > { %v2230_v54 = vpop.f32.mrf.mxu0 }
 0x189   : > { %v1010_v59 = vadd.f32 %v2230_v54, %v3103_v55 }
 0x18a   : > { %v1004_v34 = vpop.f32.mrf.mxu0 }
 0x18b   : > { %v1005_v35 = vadd.f32 %v3103_v55, %v1004_v34  ;;  %v1561_v34 = vld [vmem:[%s3382_s7 + $0x10] sm:$0xff] }
 0x18d   : > { %2537 = vtanh.f32 %v1005_v35  ;;  %v2233_v36 = vpop.f32.mrf.mxu0 }
 0x18e   : > { %2539 = vtanh.f32 %v1010_v59  ;;  %v1020_v39 = vadd.f32 %v2233_v36, %v3103_v55  ;;  %v1562_v59 = vld [vmem:[%s3382_s7 + $0x18] sm:$0xff]  ;;  %v1560_v36 = vld [vmem:[%s3382_s7 + $0x8] sm:$0xff] }
 0x18f   : > { %v1014_v41 = vpop.f32.mrf.mxu0  ;;  %2332 = vmatprep.subr.mxu0 %v1562_v59 }
 0x190   : > { %v1015_v42 = vadd.f32 %v3103_v55, %v1014_v41  ;;  %2333 = vmatpush3.msra.mxu0 %v1562_v59 }
 0x191   : > { %v2236_v43 = vpop.f32.mrf.mxu0  ;;  %2334 = vmatprep.subr.mxu0 %v1561_v34 }
 0x192   : > { %2541 = vtanh.f32 %v1015_v42  ;;  %v1030_v45 = vadd.f32 %v2236_v43, %v3103_v55  ;;  %2335 = vmatpush3.msra.mxu0 %v1561_v34  ;;  %v1559_v42 = vld [vmem:[%s3382_s7] sm:$0xff] }
 0x193   : > { %2543 = vtanh.f32 %v1020_v39  ;;  %v1024_v46 = vpop.f32.mrf.mxu0  ;;  %2336 = vmatprep.subr.mxu0 %v1560_v36 }
 0x194   : > { %v1025_v37 = vadd.f32 %v3103_v55, %v1024_v46  ;;  %2337 = vmatpush3.msra.mxu0 %v1560_v36 }
 0x195   : > { %v2239_v48 = vpop.f32.mrf.mxu0  ;;  %2338 = vmatprep.subr.mxu0 %v1559_v42 }
 0x196   : > { %2545 = vtanh.f32 %v1025_v37  ;;  %v1040_v49 = vadd.f32 %v2239_v48, %v3103_v55  ;;  %2339 = vmatpush3.msra.mxu0 %v1559_v42 }
 0x197   : > { %2547 = vtanh.f32 %v1030_v45  ;;  %v1034_v50 = vpop.f32.mrf.mxu0 }
 0x198   : > { %v1035_v52 = vadd.f32 %v3103_v55, %v1034_v50 }
 0x199   : > { %v2242_v53 = vpop.f32.mrf.mxu0 }
 0x19a   : > { %v2538_v56 = vpop.eup %2537  ;;  %2549 = vtanh.f32 %v1035_v52  ;;  %v1050_v58 = vadd.f32 %v2242_v53, %v3103_v55 }
 0x19b   : > { %v2540_v57 = vpop.eup %2539  ;;  %2551 = vtanh.f32 %v1040_v49  ;;  %v1044_v28 = vpop.f32.mrf.mxu0  ;;  %2284 = vmatprep.mubr.msk.f32.mxu1 %vm841_vm0, %v2538_v56 }
 0x19c   : > { %v1045_v60 = vadd.f32 %v3103_v55, %v1044_v28  ;;  %2285 = vmatmul.mubr.msk.f32.vlgmr.msra.gmra.mxu1 %vm841_vm0, %v2540_v57 }
 0x19e   : > { %2553 = vtanh.f32 %v1045_v60 }
 0x19f   : > { %v2542_v61 = vpop.eup %2541  ;;  %2555 = vtanh.f32 %v1050_v58 }
 0x1a0   : > { %v2544_v62 = vpop.eup %2543  ;;  %2287 = vmatprep.mubr.msk.f32.mxu1 %vm841_vm0, %v2542_v61 }
 0x1a1   : > { %2288 = vmatmul.mubr.msk.f32.gmra.mxu1 %vm841_vm0, %v2544_v62 }
 0x1a3   : > { %v2546_v63 = vpop.eup %2545  ;;  %v2245_v1 = vpop.f32.mrf.mxu0 }
 0x1a4   : > { %v2548_v2 = vpop.eup %2547  ;;  %2290 = vmatprep.mubr.msk.f32.mxu1 %vm841_vm0, %v2546_v63  ;;  %v1060_v3 = vadd.f32 %v2245_v1, %v3103_v55 }
 0x1a5   : > { %v1054_v7 = vpop.f32.mrf.mxu0  ;;  %2291 = vmatmul.mubr.msk.f32.gmra.mxu1 %vm841_vm0, %v2548_v2 }
 0x1a6   : > { %v1055_v51 = vadd.f32 %v3103_v55, %v1054_v7 }
 0x1a7   : > { %v2550_v44 = vpop.eup %2549 }
 0x1a8   : > { %v2552_v38 = vpop.eup %2551  ;;  %2557 = vtanh.f32 %v1055_v51  ;;  %2293 = vmatprep.mubr.msk.f32.mxu1 %vm841_vm0, %v2550_v44 }
 0x1a9   : > { %2559 = vtanh.f32 %v1060_v3  ;;  %2294 = vmatmul.mubr.msk.f32.gmra.mxu1 %vm841_vm0, %v2552_v38 }
 0x1ab   : > { %v2554_v4 = vpop.eup %2553 }
 0x1ac   : > { %v2556_v5 = vpop.eup %2555  ;;  %2296 = vmatprep.mubr.msk.f32.mxu1 %vm841_vm0, %v2554_v4 }
 0x1ad   : > { %2297 = vmatmul.mubr.msk.f32.gmra.mxu1 %vm841_vm0, %v2556_v5 }
 0x1b1   : > { %v2248_v6 = vpop.f32.mrf.mxu0 }
 0x1b2   : > { %v1070_v8 = vadd.f32 %v2248_v6, %v3103_v55 }
 0x1b3   : > { %v1064_v9 = vpop.f32.mrf.mxu0 }
 0x1b4   : > { %v1065_v0 = vadd.f32 %v3103_v55, %v1064_v9 }
 0x1b5   : > { %v2558_v10 = vpop.eup %2557 }
 0x1b6   : > { %v2560_v11 = vpop.eup %2559  ;;  %2561 = vtanh.f32 %v1065_v0  ;;  %2299 = vmatprep.mubr.msk.f32.mxu1 %vm841_vm0, %v2558_v10  ;;  %v3184_v0 = vld [vmem:[%s3381_s6] ss:$0 sm:$0xff] }
 0x1b7   : > { %2563 = vtanh.f32 %v1070_v8  ;;  %2300 = vmatmul.mubr.msk.f32.gmra.mxu1 %vm841_vm0, %v2560_v11 }
 0x1bb   : > { %v2251_v12 = vpop.f32.mrf.mxu0 }
 0x1bc   : > { %v1080_v13 = vadd.f32 %v2251_v12, %v3103_v55 }
 0x1bd   : > { %v1074_v14 = vpop.f32.mrf.mxu0 }
 0x1be   : > { %v1075_v15 = vadd.f32 %v3103_v55, %v1074_v14 }
 0x1c0   : > { %2565 = vtanh.f32 %v1075_v15 }
 0x1c1   : > { %2567 = vtanh.f32 %v1080_v13 }
 0x1c3   : > { %v2562_v16 = vpop.eup %2561 }
 0x1c4   : > { %v2564_v17 = vpop.eup %2563  ;;  %2302 = vmatprep.mubr.msk.f32.mxu1 %vm841_vm0, %v2562_v16 }
 0x1c5   : > { %2303 = vmatmul.mubr.msk.f32.gmra.mxu1 %vm841_vm0, %v2564_v17 }
 0x1c9   : > { %v2254_v18 = vpop.f32.mrf.mxu1 }
 0x1ca   : > { %v1090_v19 = vadd.f32 %v2254_v18, %v3103_v55 }
 0x1cb   : > { %v1084_v20 = vpop.f32.mrf.mxu1 }
 0x1cc   : > { %v1085_v21 = vadd.f32 %v3103_v55, %v1084_v20 }
 0x1cd   : > { %v2566_v22 = vpop.eup %2565 }
 0x1ce   : > { %v2568_v23 = vpop.eup %2567  ;;  %2569 = vtanh.f32 %v1085_v21  ;;  %2305 = vmatprep.mubr.msk.f32.mxu1 %vm841_vm0, %v2566_v22 }
 0x1cf   : > { %2571 = vtanh.f32 %v1090_v19  ;;  %2306 = vmatmul.mubr.msk.f32.gmra.mxu1 %vm841_vm0, %v2568_v23 }
 0x1d3   : > { %v2257_v24 = vpop.f32.mrf.mxu1 }
 0x1d4   : > { %v1100_v25 = vadd.f32 %v2257_v24, %v3103_v55 }
 0x1d5   : > { %v1094_v26 = vpop.f32.mrf.mxu1 }
 0x1d6   : > { %v1095_v27 = vadd.f32 %v3103_v55, %v1094_v26 }
 0x1d8   : > { %2573 = vtanh.f32 %v1095_v27 }
 0x1d9   : > { %2575 = vtanh.f32 %v1100_v25 }
 0x1db   : > { %v2570_v47 = vpop.eup %2569 }
 0x1dc   : > { %v2572_v29 = vpop.eup %2571  ;;  %2308 = vmatprep.mubr.msk.f32.mxu1 %vm841_vm0, %v2570_v47 }
 0x1dd   : > { %2309 = vmatmul.mubr.msk.f32.gmra.mxu1 %vm841_vm0, %v2572_v29 }
 0x1e1   : > { %v2260_v30 = vpop.f32.mrf.mxu1 }
 0x1e2   : > { %v1110_v31 = vadd.f32 %v2260_v30, %v3103_v55 }
 0x1e3   : > { %v1104_v40 = vpop.f32.mrf.mxu1 }
 0x1e4   : > { %v1105_v32 = vadd.f32 %v3103_v55, %v1104_v40 }
 0x1e5   : > { %v2574_v33 = vpop.eup %2573 }
 0x1e6   : > { %v2576_v54 = vpop.eup %2575  ;;  %2577 = vtanh.f32 %v1105_v32  ;;  %2311 = vmatprep.mubr.msk.f32.mxu1 %vm841_vm0, %v2574_v33 }
 0x1e7   : > { %2579 = vtanh.f32 %v1110_v31  ;;  %2312 = vmatmul.mubr.msk.f32.gmra.mxu1 %vm841_vm0, %v2576_v54 }
 0x1eb   : > { %v2263_v35 = vpop.f32.mrf.mxu1 }
 0x1ec   : > { %v1120_v39 = vadd.f32 %v2263_v35, %v3103_v55 }
 0x1ed   : > { %v1114_v41 = vpop.f32.mrf.mxu1 }
 0x1ee   : > { %v1115_v43 = vadd.f32 %v3103_v55, %v1114_v41 }
 0x1f0   : > { %2581 = vtanh.f32 %v1115_v43 }
 0x1f1   : > { %2583 = vtanh.f32 %v1120_v39 }
 0x1f3   : > { %v2578_v45 = vpop.eup %2577 }
 0x1f4   : > { %v2580_v46 = vpop.eup %2579  ;;  %2314 = vmatprep.mubr.msk.f32.mxu1 %vm841_vm0, %v2578_v45 }
 0x1f5   : > { %2315 = vmatmul.mubr.msk.f32.gmra.mxu1 %vm841_vm0, %v2580_v46 }
 0x1f9   : > { %v2266_v37 = vpop.f32.mrf.mxu1 }
 0x1fa   : > { %v1130_v48 = vadd.f32 %v2266_v37, %v3103_v55 }
 0x1fb   : > { %v1124_v49 = vpop.f32.mrf.mxu1 }
 0x1fc   : > { %v1125_v50 = vadd.f32 %v3103_v55, %v1124_v49 }
 0x1fd   : > { %v2582_v52 = vpop.eup %2581 }
 0x1fe   : > { %v2584_v53 = vpop.eup %2583  ;;  %2585 = vtanh.f32 %v1125_v50  ;;  %2317 = vmatprep.mubr.msk.f32.mxu1 %vm841_vm0, %v2582_v52 }
 0x1ff   : > { %2587 = vtanh.f32 %v1130_v48  ;;  %2318 = vmatmul.mubr.msk.f32.gmra.mxu1 %vm841_vm0, %v2584_v53 }
 0x203   : > { %v2269_v56 = vpop.f32.mrf.mxu1 }
 0x204   : > { %v1140_v57 = vadd.f32 %v2269_v56, %v3103_v55 }
 0x205   : > { %v1134_v58 = vpop.f32.mrf.mxu1 }
 0x206   : > { %v1135_v28 = vadd.f32 %v3103_v55, %v1134_v58 }
 0x208   : > { %2589 = vtanh.f32 %v1135_v28 }
 0x209   : > { %2591 = vtanh.f32 %v1140_v57 }
 0x20b   : > { %v2586_v60 = vpop.eup %2585 }
 0x20c   : > { %v2588_v61 = vpop.eup %2587  ;;  %2320 = vmatprep.mubr.msk.f32.mxu1 %vm841_vm0, %v2586_v60 }
 0x20d   : > { %2321 = vmatmul.mubr.msk.f32.gmra.mxu1 %vm841_vm0, %v2588_v61 }
 0x211   : > { %v2272_v62 = vpop.f32.mrf.mxu1 }
 0x212   : > { %v1150_v63 = vadd.f32 %v2272_v62, %v3103_v55 }
 0x213   : > { %v1144_v1 = vpop.f32.mrf.mxu1 }
 0x214   : > { %v1145_v2 = vadd.f32 %v3103_v55, %v1144_v1 }
 0x215   : > { %v2590_v3 = vpop.eup %2589 }
 0x216   : > { %v2592_v7 = vpop.eup %2591  ;;  %2593 = vtanh.f32 %v1145_v2  ;;  %2323 = vmatprep.mubr.msk.f32.mxu1 %vm841_vm0, %v2590_v3 }
 0x217   : > { %2595 = vtanh.f32 %v1150_v63  ;;  %2324 = vmatmul.mubr.msk.f32.gmra.mxu1 %vm841_vm0, %v2592_v7 }
 0x21b   : > { %v2275_v51 = vpop.f32.mrf.mxu1 }
 0x21c   : > { %v1160_v44 = vadd.f32 %v2275_v51, %v3103_v55 }
 0x21d   : > { %v1154_v38 = vpop.f32.mrf.mxu1 }
 0x21e   : > { %v1155_v4 = vadd.f32 %v3103_v55, %v1154_v38 }
 0x220   : > { %2597 = vtanh.f32 %v1155_v4 }
 0x221   : > { %2599 = vtanh.f32 %v1160_v44 }
 0x223   : > { %v2594_v5 = vpop.eup %2593 }
 0x224   : > { %v2596_v6 = vpop.eup %2595  ;;  %2326 = vmatprep.mubr.msk.f32.mxu1 %vm841_vm0, %v2594_v5 }
 0x225   : > { %2327 = vmatmul.mubr.msk.f32.gmra.mxu1 %vm841_vm0, %v2596_v6 }
 0x22d   : > { %v2598_v8 = vpop.eup %2597 }
 0x22e   : > { %v2600_v9 = vpop.eup %2599  ;;  %2329 = vmatprep.mubr.msk.f32.mxu1 %vm841_vm0, %v2598_v8 }
 0x22f   : > { %2330 = vmatmul.mubr.msk.f32.gmra.mxu1 %vm841_vm0, %v2600_v9 }
 0x25c   : > { %v2286_v55 = vpop.f32.mrf.mxu1 }
 0x25d   : > { %v1374_v10 = vadd.f32 %v2286_v55, %v3184_v0 }
 0x25e   : > { %v1368_v11 = vpop.f32.mrf.mxu1 }
 0x25f   : > { %v1369_v12 = vadd.f32 %v3184_v0, %v1368_v11 }
 0x261   : > { %2601 = vtanh.f32 %v1369_v12  ;;  %v2289_v13 = vpop.f32.mrf.mxu1 }
 0x262   : > { %2603 = vtanh.f32 %v1374_v10  ;;  %v1384_v14 = vadd.f32 %v2289_v13, %v3184_v0 }
 0x263   : > { %v1378_v15 = vpop.f32.mrf.mxu1 }
 0x264   : > { %v1379_v16 = vadd.f32 %v3184_v0, %v1378_v15 }
 0x265   : > { %v2292_v17 = vpop.f32.mrf.mxu1 }
 0x266   : > { %2605 = vtanh.f32 %v1379_v16  ;;  %v1394_v18 = vadd.f32 %v2292_v17, %v3184_v0 }
 0x267   : > { %2607 = vtanh.f32 %v1384_v14  ;;  %v1388_v19 = vpop.f32.mrf.mxu1 }
 0x268   : > { %v1389_v20 = vadd.f32 %v3184_v0, %v1388_v19 }
 0x269   : > { %v2295_v21 = vpop.f32.mrf.mxu1 }
 0x26a   : > { %2609 = vtanh.f32 %v1389_v20  ;;  %v1404_v22 = vadd.f32 %v2295_v21, %v3184_v0 }
 0x26b   : > { %2611 = vtanh.f32 %v1394_v18  ;;  %v1398_v23 = vpop.f32.mrf.mxu1 }
 0x26c   : > { %v1399_v24 = vadd.f32 %v3184_v0, %v1398_v23 }
 0x26d   : > { %v2298_v25 = vpop.f32.mrf.mxu1 }
 0x26e   : > { %v2602_v26 = vpop.eup %2601  ;;  %2613 = vtanh.f32 %v1399_v24  ;;  %v1414_v47 = vadd.f32 %v2298_v25, %v3184_v0 }
 0x26f   : > { %v2604_v27 = vpop.eup %2603  ;;  %2615 = vtanh.f32 %v1404_v22  ;;  %v1408_v29 = vpop.f32.mrf.mxu1  ;;  %2340 = vmatprep.mubr.msk.f32.mxu0 %vm841_vm0, %v2602_v26 }
 0x270   : > { %v1409_v30 = vadd.f32 %v3184_v0, %v1408_v29  ;;  %2341 = vmatmul.mubr.msk.f32.vlgmr.msra.gmra.mxu0 %vm841_vm0, %v2604_v27 }
 0x272   : > { %2617 = vtanh.f32 %v1409_v30 }
 0x273   : > { %v2606_v31 = vpop.eup %2605  ;;  %2619 = vtanh.f32 %v1414_v47 }
 0x274   : > { %v2608_v40 = vpop.eup %2607  ;;  %2343 = vmatprep.mubr.msk.f32.mxu0 %vm841_vm0, %v2606_v31 }
 0x275   : > { %2344 = vmatmul.mubr.msk.f32.gmra.mxu0 %vm841_vm0, %v2608_v40 }
 0x277   : > { %v2610_v32 = vpop.eup %2609  ;;  %v2301_v33 = vpop.f32.mrf.mxu1 }
 0x278   : > { %v2612_v54 = vpop.eup %2611  ;;  %2346 = vmatprep.mubr.msk.f32.mxu0 %vm841_vm0, %v2610_v32  ;;  %v1424_v59 = vadd.f32 %v2301_v33, %v3184_v0 }
 0x279   : > { %v1418_v34 = vpop.f32.mrf.mxu1  ;;  %2347 = vmatmul.mubr.msk.f32.gmra.mxu0 %vm841_vm0, %v2612_v54 }
 0x27a   : > { %v1419_v35 = vadd.f32 %v3184_v0, %v1418_v34 }
 0x27b   : > { %v2614_v36 = vpop.eup %2613 }
 0x27c   : > { %v2616_v39 = vpop.eup %2615  ;;  %2621 = vtanh.f32 %v1419_v35  ;;  %2349 = vmatprep.mubr.msk.f32.mxu0 %vm841_vm0, %v2614_v36 }
 0x27d   : > { %2623 = vtanh.f32 %v1424_v59  ;;  %2350 = vmatmul.mubr.msk.f32.gmra.mxu0 %vm841_vm0, %v2616_v39 }
 0x27f   : > { %v2618_v41 = vpop.eup %2617 }
 0x280   : > { %v2620_v42 = vpop.eup %2619  ;;  %2352 = vmatprep.mubr.msk.f32.mxu0 %vm841_vm0, %v2618_v41 }
 0x281   : > { %2353 = vmatmul.mubr.msk.f32.gmra.mxu0 %vm841_vm0, %v2620_v42 }
 0x285   : > { %v2304_v43 = vpop.f32.mrf.mxu1 }
 0x286   : > { %v1434_v45 = vadd.f32 %v2304_v43, %v3184_v0 }
 0x287   : > { %v1428_v46 = vpop.f32.mrf.mxu1 }
 0x288   : > { %v1429_v37 = vadd.f32 %v3184_v0, %v1428_v46 }
 0x289   : > { %v2622_v48 = vpop.eup %2621 }
 0x28a   : > { %v2624_v49 = vpop.eup %2623  ;;  %2625 = vtanh.f32 %v1429_v37  ;;  %2355 = vmatprep.mubr.msk.f32.mxu0 %vm841_vm0, %v2622_v48 }
 0x28b   : > { %2627 = vtanh.f32 %v1434_v45  ;;  %2356 = vmatmul.mubr.msk.f32.gmra.mxu0 %vm841_vm0, %v2624_v49 }
 0x28f   : > { %v2307_v50 = vpop.f32.mrf.mxu1 }
 0x290   : > { %v1444_v52 = vadd.f32 %v2307_v50, %v3184_v0 }
 0x291   : > { %v1438_v53 = vpop.f32.mrf.mxu1 }
 0x292   : > { %v1439_v56 = vadd.f32 %v3184_v0, %v1438_v53 }
 0x294   : > { %2629 = vtanh.f32 %v1439_v56 }
 0x295   : > { %2631 = vtanh.f32 %v1444_v52 }
 0x297   : > { %v2626_v57 = vpop.eup %2625 }
 0x298   : > { %v2628_v58 = vpop.eup %2627  ;;  %2358 = vmatprep.mubr.msk.f32.mxu0 %vm841_vm0, %v2626_v57 }
 0x299   : > { %2359 = vmatmul.mubr.msk.f32.gmra.mxu0 %vm841_vm0, %v2628_v58 }
 0x29d   : > { %v2310_v28 = vpop.f32.mrf.mxu1 }
 0x29e   : > { %v1454_v60 = vadd.f32 %v2310_v28, %v3184_v0 }
 0x29f   : > { %v1448_v61 = vpop.f32.mrf.mxu1 }
 0x2a0   : > { %v1449_v62 = vadd.f32 %v3184_v0, %v1448_v61 }
 0x2a1   : > { %v2630_v63 = vpop.eup %2629 }
 0x2a2   : > { %v2632_v1 = vpop.eup %2631  ;;  %2633 = vtanh.f32 %v1449_v62  ;;  %2361 = vmatprep.mubr.msk.f32.mxu0 %vm841_vm0, %v2630_v63 }
 0x2a3   : > { %2635 = vtanh.f32 %v1454_v60  ;;  %2362 = vmatmul.mubr.msk.f32.gmra.mxu0 %vm841_vm0, %v2632_v1 }
 0x2a7   : > { %v2313_v2 = vpop.f32.mrf.mxu1 }
 0x2a8   : > { %v1464_v3 = vadd.f32 %v2313_v2, %v3184_v0 }
 0x2a9   : > { %v1458_v7 = vpop.f32.mrf.mxu1 }
 0x2aa   : > { %v1459_v51 = vadd.f32 %v3184_v0, %v1458_v7 }
 0x2ac   : > { %2637 = vtanh.f32 %v1459_v51 }
 0x2ad   : > { %2639 = vtanh.f32 %v1464_v3 }
 0x2af   : > { %v2634_v44 = vpop.eup %2633 }
 0x2b0   : > { %v2636_v38 = vpop.eup %2635  ;;  %2364 = vmatprep.mubr.msk.f32.mxu0 %vm841_vm0, %v2634_v44 }
 0x2b1   : > { %2365 = vmatmul.mubr.msk.f32.gmra.mxu0 %vm841_vm0, %v2636_v38 }
 0x2b5   : > { %v2316_v4 = vpop.f32.mrf.mxu1 }
 0x2b6   : > { %v1474_v5 = vadd.f32 %v2316_v4, %v3184_v0 }
 0x2b7   : > { %v1468_v6 = vpop.f32.mrf.mxu1 }
 0x2b8   : > { %v1469_v8 = vadd.f32 %v3184_v0, %v1468_v6 }
 0x2b9   : > { %v2638_v9 = vpop.eup %2637 }
 0x2ba   : > { %v2640_v55 = vpop.eup %2639  ;;  %2641 = vtanh.f32 %v1469_v8  ;;  %2367 = vmatprep.mubr.msk.f32.mxu0 %vm841_vm0, %v2638_v9 }
 0x2bb   : > { %2643 = vtanh.f32 %v1474_v5  ;;  %2368 = vmatmul.mubr.msk.f32.gmra.mxu0 %vm841_vm0, %v2640_v55 }
 0x2bf   : > { %v2319_v10 = vpop.f32.mrf.mxu1 }
 0x2c0   : > { %v1484_v11 = vadd.f32 %v2319_v10, %v3184_v0 }
 0x2c1   : > { %v1478_v12 = vpop.f32.mrf.mxu1 }
 0x2c2   : > { %v1479_v13 = vadd.f32 %v3184_v0, %v1478_v12 }
 0x2c4   : > { %2645 = vtanh.f32 %v1479_v13 }
 0x2c5   : > { %2647 = vtanh.f32 %v1484_v11 }
 0x2c7   : > { %v2642_v14 = vpop.eup %2641 }
 0x2c8   : > { %v2644_v15 = vpop.eup %2643  ;;  %2370 = vmatprep.mubr.msk.f32.mxu0 %vm841_vm0, %v2642_v14 }
 0x2c9   : > { %2371 = vmatmul.mubr.msk.f32.gmra.mxu0 %vm841_vm0, %v2644_v15 }
 0x2cd   : > { %v2322_v16 = vpop.f32.mrf.mxu1 }
 0x2ce   : > { %v1494_v17 = vadd.f32 %v2322_v16, %v3184_v0 }
 0x2cf   : > { %v1488_v18 = vpop.f32.mrf.mxu1 }
 0x2d0   : > { %v1489_v19 = vadd.f32 %v3184_v0, %v1488_v18 }
 0x2d1   : > { %v2646_v20 = vpop.eup %2645 }
 0x2d2   : > { %v2648_v21 = vpop.eup %2647  ;;  %2649 = vtanh.f32 %v1489_v19  ;;  %2373 = vmatprep.mubr.msk.f32.mxu0 %vm841_vm0, %v2646_v20 }
 0x2d3   : > { %2651 = vtanh.f32 %v1494_v17  ;;  %2374 = vmatmul.mubr.msk.f32.gmra.mxu0 %vm841_vm0, %v2648_v21 }
 0x2d7   : > { %v2325_v22 = vpop.f32.mrf.mxu1 }
 0x2d8   : > { %v1504_v23 = vadd.f32 %v2325_v22, %v3184_v0 }
 0x2d9   : > { %v1498_v24 = vpop.f32.mrf.mxu1 }
 0x2da   : > { %v1499_v25 = vadd.f32 %v3184_v0, %v1498_v24 }
 0x2dc   : > { %2653 = vtanh.f32 %v1499_v25 }
 0x2dd   : > { %2655 = vtanh.f32 %v1504_v23 }
 0x2df   : > { %v2650_v26 = vpop.eup %2649 }
 0x2e0   : > { %v2652_v27 = vpop.eup %2651  ;;  %2376 = vmatprep.mubr.msk.f32.mxu0 %vm841_vm0, %v2650_v26 }
 0x2e1   : > { %2377 = vmatmul.mubr.msk.f32.gmra.mxu0 %vm841_vm0, %v2652_v27 }
 0x2e5   : > { %v2328_v47 = vpop.f32.mrf.mxu1 }
 0x2e6   : > { %v1514_v29 = vadd.f32 %v2328_v47, %v3184_v0 }
 0x2e7   : > { %v1508_v30 = vpop.f32.mrf.mxu1 }
 0x2e8   : > { %v1509_v31 = vadd.f32 %v3184_v0, %v1508_v30 }
 0x2e9   : > { %v2654_v40 = vpop.eup %2653 }
 0x2ea   : > { %v2656_v32 = vpop.eup %2655  ;;  %2657 = vtanh.f32 %v1509_v31  ;;  %2379 = vmatprep.mubr.msk.f32.mxu0 %vm841_vm0, %v2654_v40 }
 0x2eb   : > { %2659 = vtanh.f32 %v1514_v29  ;;  %2380 = vmatmul.mubr.msk.f32.gmra.mxu0 %vm841_vm0, %v2656_v32 }
 0x2ef   : > { %v2331_v33 = vpop.f32.mrf.mxu1 }
 0x2f0   : > { %v1524_v54 = vadd.f32 %v2331_v33, %v3184_v0 }
 0x2f1   : > { %v1518_v59 = vpop.f32.mrf.mxu1 }
 0x2f2   : > { %v1519_v34 = vadd.f32 %v3184_v0, %v1518_v59  ;;  %v3256_v0 = vld [vmem:[%s3383_s8] ss:$0 sm:$0xff] }
 0x2f4   : > { %2661 = vtanh.f32 %v1519_v34 }
 0x2f5   : > { %2663 = vtanh.f32 %v1524_v54 }
 0x2f7   : > { %v2658_v35 = vpop.eup %2657 }
 0x2f8   : > { %v2660_v36 = vpop.eup %2659  ;;  %2382 = vmatprep.mubr.msk.f32.mxu0 %vm841_vm0, %v2658_v35 }
 0x2f9   : > { %2383 = vmatmul.mubr.msk.f32.gmra.mxu0 %vm841_vm0, %v2660_v36 }
 0x301   : > { %v2662_v39 = vpop.eup %2661 }
 0x302   : > { %v2664_v41 = vpop.eup %2663  ;;  %2385 = vmatprep.mubr.msk.f32.mxu0 %vm841_vm0, %v2662_v39 }
 0x303   : > { %2386 = vmatmul.mubr.msk.f32.gmra.mxu0 %vm841_vm0, %v2664_v41 }
 0x330   : > { %v2342_v42 = vpop.f32.mrf.mxu0 }
 0x331   : > { %v1738_v43 = vadd.f32 %v2342_v42, %v3256_v0 }
 0x332   : > { %v1732_v45 = vpop.f32.mrf.mxu0 }
 0x333   : > { %1892 = vst [vmem:[%s3259_s25 + $0x8] sm:$0xff] %v1738_v43  ;;  %v1733_v46 = vadd.f32 %v3256_v0, %v1732_v45 }
 0x335   : > { %1891 = vst [vmem:[%s3259_s25] sm:$0xff] %v1733_v46  ;;  %v2345_v37 = vpop.f32.mrf.mxu0 }
 0x336   : > { %v1748_v48 = vadd.f32 %v2345_v37, %v3256_v0 }
 0x337   : > { %v1742_v49 = vpop.f32.mrf.mxu0 }
 0x338   : > { %1894 = vst [vmem:[%s3259_s25 + $0x18] sm:$0xff] %v1748_v48  ;;  %v1743_v50 = vadd.f32 %v3256_v0, %v1742_v49 }
 0x339   : > { %v2348_v52 = vpop.f32.mrf.mxu0 }
 0x33a   : > { %1893 = vst [vmem:[%s3259_s25 + $0x10] sm:$0xff] %v1743_v50  ;;  %v1758_v53 = vadd.f32 %v2348_v52, %v3256_v0 }
 0x33b   : > { %v1752_v56 = vpop.f32.mrf.mxu0 }
 0x33c   : > { %1896 = vst [vmem:[%s3259_s25 + $0x28] sm:$0xff] %v1758_v53  ;;  %v1753_v57 = vadd.f32 %v3256_v0, %v1752_v56 }
 0x33d   : > { %v2351_v58 = vpop.f32.mrf.mxu0 }
 0x33e   : > { %1895 = vst [vmem:[%s3259_s25 + $0x20] sm:$0xff] %v1753_v57  ;;  %v1768_v28 = vadd.f32 %v2351_v58, %v3256_v0 }
 0x33f   : > { %v1762_v60 = vpop.f32.mrf.mxu0 }
 0x340   : > { %1898 = vst [vmem:[%s3259_s25 + $0x38] sm:$0xff] %v1768_v28  ;;  %v1763_v61 = vadd.f32 %v3256_v0, %v1762_v60 }
 0x341   : > { %v2354_v62 = vpop.f32.mrf.mxu0 }
 0x342   : > { %1897 = vst [vmem:[%s3259_s25 + $0x30] sm:$0xff] %v1763_v61  ;;  %v1778_v63 = vadd.f32 %v2354_v62, %v3256_v0 }
 0x343   : > { %v1772_v1 = vpop.f32.mrf.mxu0 }
 0x344   : > { %1900 = vst [vmem:[%s3259_s25 + $0x48] sm:$0xff] %v1778_v63  ;;  %v1773_v2 = vadd.f32 %v3256_v0, %v1772_v1 }
 0x346   : > { %1899 = vst [vmem:[%s3259_s25 + $0x40] sm:$0xff] %v1773_v2 }
 0x34b   : > { %v2357_v3 = vpop.f32.mrf.mxu0 }
 0x34c   : > { %v1788_v7 = vadd.f32 %v2357_v3, %v3256_v0 }
 0x34d   : > { %v1782_v51 = vpop.f32.mrf.mxu0 }
 0x34e   : > { %1902 = vst [vmem:[%s3259_s25 + $0x58] sm:$0xff] %v1788_v7  ;;  %v1783_v44 = vadd.f32 %v3256_v0, %v1782_v51 }
 0x350   : > { %1901 = vst [vmem:[%s3259_s25 + $0x50] sm:$0xff] %v1783_v44 }
 0x359   : > { %v2360_v38 = vpop.f32.mrf.mxu0 }
 0x35a   : > { %v1798_v4 = vadd.f32 %v2360_v38, %v3256_v0 }
 0x35b   : > { %v1792_v5 = vpop.f32.mrf.mxu0 }
 0x35c   : > { %1904 = vst [vmem:[%s3259_s25 + $0x68] sm:$0xff] %v1798_v4  ;;  %v1793_v6 = vadd.f32 %v3256_v0, %v1792_v5 }
 0x35e   : > { %1903 = vst [vmem:[%s3259_s25 + $0x60] sm:$0xff] %v1793_v6 }
 0x363   : > { %v2363_v8 = vpop.f32.mrf.mxu0 }
 0x364   : > { %v1808_v9 = vadd.f32 %v2363_v8, %v3256_v0 }
 0x365   : > { %v1802_v55 = vpop.f32.mrf.mxu0 }
 0x366   : > { %1906 = vst [vmem:[%s3259_s25 + $0x78] sm:$0xff] %v1808_v9  ;;  %v1803_v10 = vadd.f32 %v3256_v0, %v1802_v55 }
 0x368   : > { %1905 = vst [vmem:[%s3259_s25 + $0x70] sm:$0xff] %v1803_v10 }
 0x371   : > { %v2366_v11 = vpop.f32.mrf.mxu0 }
 0x372   : > { %v1818_v12 = vadd.f32 %v2366_v11, %v3256_v0 }
 0x373   : > { %v1812_v13 = vpop.f32.mrf.mxu0 }
 0x374   : > { %1908 = vst [vmem:[%s3259_s25 + $0x88] sm:$0xff] %v1818_v12  ;;  %v1813_v14 = vadd.f32 %v3256_v0, %v1812_v13 }
 0x376   : > { %1907 = vst [vmem:[%s3259_s25 + $0x80] sm:$0xff] %v1813_v14 }
 0x37b   : > { %v2369_v15 = vpop.f32.mrf.mxu0 }
 0x37c   : > { %v1828_v16 = vadd.f32 %v2369_v15, %v3256_v0 }
 0x37d   : > { %v1822_v17 = vpop.f32.mrf.mxu0 }
 0x37e   : > { %1910 = vst [vmem:[%s3259_s25 + $0x98] sm:$0xff] %v1828_v16  ;;  %v1823_v18 = vadd.f32 %v3256_v0, %v1822_v17 }
 0x380   : > { %1909 = vst [vmem:[%s3259_s25 + $0x90] sm:$0xff] %v1823_v18 }
 0x389   : > { %v2372_v19 = vpop.f32.mrf.mxu0 }
 0x38a   : > { %v1838_v20 = vadd.f32 %v2372_v19, %v3256_v0 }
 0x38b   : > { %v1832_v21 = vpop.f32.mrf.mxu0 }
 0x38c   : > { %1912 = vst [vmem:[%s3259_s25 + $0xa8] sm:$0xff] %v1838_v20  ;;  %v1833_v22 = vadd.f32 %v3256_v0, %v1832_v21 }
 0x38e   : > { %1911 = vst [vmem:[%s3259_s25 + $0xa0] sm:$0xff] %v1833_v22 }
 0x393   : > { %v2375_v23 = vpop.f32.mrf.mxu0 }
 0x394   : > { %v1848_v24 = vadd.f32 %v2375_v23, %v3256_v0 }
 0x395   : > { %v1842_v25 = vpop.f32.mrf.mxu0 }
 0x396   : > { %1914 = vst [vmem:[%s3259_s25 + $0xb8] sm:$0xff] %v1848_v24  ;;  %v1843_v26 = vadd.f32 %v3256_v0, %v1842_v25 }
 0x398   : > { %1913 = vst [vmem:[%s3259_s25 + $0xb0] sm:$0xff] %v1843_v26 }
 0x3a1   : > { %v2378_v27 = vpop.f32.mrf.mxu0 }
 0x3a2   : > { %v1858_v47 = vadd.f32 %v2378_v27, %v3256_v0 }
 0x3a3   : > { %v1852_v29 = vpop.f32.mrf.mxu0 }
 0x3a4   : > { %1916 = vst [vmem:[%s3259_s25 + $0xc8] sm:$0xff] %v1858_v47  ;;  %v1853_v30 = vadd.f32 %v3256_v0, %v1852_v29 }
 0x3a6   : > { %1915 = vst [vmem:[%s3259_s25 + $0xc0] sm:$0xff] %v1853_v30 }
 0x3ab   : > { %v2381_v31 = vpop.f32.mrf.mxu0 }
 0x3ac   : > { %v1868_v40 = vadd.f32 %v2381_v31, %v3256_v0 }
 0x3ad   : > { %v1862_v32 = vpop.f32.mrf.mxu0 }
 0x3ae   : > { %1918 = vst [vmem:[%s3259_s25 + $0xd8] sm:$0xff] %v1868_v40  ;;  %v1863_v33 = vadd.f32 %v3256_v0, %v1862_v32 }
 0x3b0   : > { %1917 = vst [vmem:[%s3259_s25 + $0xd0] sm:$0xff] %v1863_v33 }
 0x3b9   : > { %v2384_v54 = vpop.f32.mrf.mxu0 }
 0x3ba   : > { %v1878_v59 = vadd.f32 %v2384_v54, %v3256_v0 }
 0x3bb   : > { %v1872_v34 = vpop.f32.mrf.mxu0 }
 0x3bc   : > { %1920 = vst [vmem:[%s3259_s25 + $0xe8] sm:$0xff] %v1878_v59  ;;  %v1873_v35 = vadd.f32 %v3256_v0, %v1872_v34 }
 0x3be   : > { %1919 = vst [vmem:[%s3259_s25 + $0xe0] sm:$0xff] %v1873_v35 }
 0x3c3   : > { %v2387_v36 = vpop.f32.mrf.mxu0 }
 0x3c4   : > { %v1888_v39 = vadd.f32 %v2387_v36, %v3256_v0 }
 0x3c5   : > { %v1882_v41 = vpop.f32.mrf.mxu0 }
 0x3c6   : > { %1922 = vst [vmem:[%s3259_s25 + $0xf8] sm:$0xff] %v1888_v39  ;;  %v1883_v42 = vadd.f32 %v3256_v0, %v1882_v41 }
 0x3c8   : > { %1921 = vst [vmem:[%s3259_s25 + $0xf0] sm:$0xff] %v1883_v42 }
 0x3c9   : > { %2678 = shalt.err (!%p2675_p3)
}
 0x3ca   : > { %s2679_s22 = scalar_lea.hbm %s3326_s16, 4096  ;;  %s2683_s27 = scalar_lea.hbm %s3384_s9, 8192 }
 0x3cb   : > { %p2680_p4 = scmp.ne.s32.totalorder %s3326_s16, %s2679_s22  ;;  %p2684_p9 = scmp.lt.s32.totalorder %s3326_s16, %s3384_s9 }
 0x3cc   : > { %p2685_p10 = scmp.lt.s32.totalorder %s2683_s27, %s2679_s22 }
 0x3cd   : > { %p2681_p7 = pnand %p2680_p4, %p2820_p5 }
 0x3ce   : > { %p2686_p11 = por %p2685_p10, %p2684_p9 }
 0x3cf   : > { %p2682_p8 = pneg %p2681_p7 }
 0x3d1   : > { %p2687_p12 = pnand %p2686_p11, %p2682_p8 }
 0x3d3   : > { %2690 = shalt.err (!%p2687_p12)
}
 0x3d4   : > { %s2730_s17 = smov 128   ;;  %s2731_s21 = smov 8  }
 0x3d5   : > { %2396 = dma.vmem_to_hbm [thread:$0]  (%p2820_p5), %s3328_s28, 4096, %s3326_s16, %s3335_s13, %s2730_s17, %s2730_s17, %s2731_s21  }
 0x3d6 PF: > { %p2402_p13 = scmp.ge.s32.totalorder %s2725_s12, 2  ;;  %s1952_s23 = sand.u32 1, %s2713_s30  }
 0x3d7   : > { %s1953_s24 = scalar_lea.sflag [#allocation3], %s1952_s23 }
 0x3d8   : > { %p2399_p0 = pnand %p2402_p13, %p2824_p6 }
 0x3da   : > { %p2400_p1 = pneg %p2399_p0 }
 0x3dc   : > { %2708 = dma.done.wait (%p2400_p1), %s1953_s24, 4096  }
 0x3dd   : > { %2710 = vsyncadd (%p2400_p1), %s1953_s24, 4294963200  ;;  %p19_p2 = scmp.ge.s32.totalorder %s2807_s15, 4   ;;  %s3387_s30 = smov %s2717_s10 }
 0x3de   : > { %s3388_s10 = smov %s2721_s11  ;;  %s3389_s11 = smov %s2818_s18 }
 0x3df   : > { %s3390_s12 = smov %s2807_s15  ;;  %21 = sbr.rel (!%p19_p2) target bundleno = 3 (0x3), region = 91 }
 0x3e4   :  { %1958 = vsyncpa [#allocation3], 1 }
 0x3e5   :  { %1960 = vsyncpa [#allocation3 + $0x1], 1 }

</bundles_post_ra>
